<compile_context>
chip_gen: v6e
topology: v6e:2x2x1
jax: 0.10.0
libtpu: 0.0.40
codegen_flags: <defaults>
</compile_context>

<pallas_src>
import functools

import jax
import jax.numpy as jnp
from jax.experimental import pallas as pl
from jax.experimental.pallas import tpu as pltpu


def _round_up(x, m):
    return ((x + m - 1) // m) * m


# ----------------------------------------------------------------------------
# Kernel.  Per grid step (n, i) it produces TH output rows of image n.
#   x_mid : (1, TH, W, C) rows [i*TH, i*TH+TH)      (f32, exact passthrough)
#   x_top : (1, 1,  W, C) row   i*TH - 1 (clamped)  (halo, recomputed)
#   x_bot : (1, 1,  W, C) row   i*TH + TH (clamped) (halo, recomputed)
#   s*/b* : folded BN scale/shift (1, C) / (1, CI)  (f32)
#   w1    : (C, CI)        1x1 conv weights         (bf16)
#   w2    : (3, 3*CI, CG)  3x3 conv, rows = kx*CI+ci per ky  (bf16)
#   o_ref : (1, TH, W, C+CG)  fused [x | conv2] output (f32)
#   hpad  : VMEM scratch (TH+2, W+2, CI) bf16: zero-padded BN2+ReLU activations
# ----------------------------------------------------------------------------
def bottleneck_fused_kernel(x_mid_ref, x_top_ref, x_bot_ref,
                            s1_ref, b1_ref, w1_ref, s2_ref, b2_ref, w2_ref,
                            o_ref, hpad_ref, *, TH, H, W, C, CI, CG, cdt):
    i = pl.program_id(1)

    # Interior rows + both halo rows gathered into one (TH+2, W, C) slab.
    x_mid = x_mid_ref[0]                                  # (TH, W, C) f32
    x_top = x_top_ref[0, 0][None]                         # (1, W, C)
    x_bot = x_bot_ref[0, 0][None]                         # (1, W, C)
    x_all = jnp.concatenate([x_top, x_mid, x_bot], axis=0)  # (TH+2, W, C)

    # BN1 -> ReLU -> 1x1 conv -> BN2 -> ReLU: ONE matmul for mid + halo rows.
    t = jnp.maximum(x_all.reshape((TH + 2) * W, C) * s1_ref[...] + b1_ref[...],
                    0.0)                                                    # VPU
    h = jnp.dot(t.astype(cdt), w1_ref[...],
                preferred_element_type=jnp.float32)                         # MXU
    h = jnp.maximum(h * s2_ref[...] + b2_ref[...], 0.0)                     # VPU
    h3d = h.astype(cdt).reshape(TH + 2, W, CI)

    # Zero rows that fall outside the image: top padding (i == 0), bottom
    # padding / ragged last tile.  Row j of h3d is global row i*TH - 1 + j.
    row_ids = jax.lax.broadcasted_iota(jnp.int32, (TH + 2, 1), 0) + (i * TH - 1)
    valid = jnp.logical_and(row_ids >= 0, row_ids < H)                      # (TH+2, 1)
    h3d = jnp.where(valid[:, :, None], h3d, jnp.zeros_like(h3d))

    # Single aligned full-block store of the zero-column-padded tile
    # (no per-step full scratch zeroing; borders are the concatenated zeros).
    zcol = jnp.zeros((TH + 2, 1, CI), cdt)
    hpad_ref[...] = jnp.concatenate([zcol, h3d, zcol], axis=1)  # (TH+2, W+2, CI)

    # 3x3 conv via im2col: 3 column-shifted reads -> (TH+2, W, 3*CI), then
    # 3 matmuls with K = 3*CI accumulated in f32.
    wide = jnp.concatenate(
        [hpad_ref[:, 0:W, :], hpad_ref[:, 1:W + 1, :], hpad_ref[:, 2:W + 2, :]],
        axis=-1)                                              # (TH+2, W, 3*CI)

    acc = None
    for ky in range(3):
        lhs = wide[ky:ky + TH].reshape(TH * W, 3 * CI)
        p = jnp.dot(lhs, w2_ref[ky], preferred_element_type=jnp.float32)   # MXU
        acc = p if acc is None else acc + p

    conv = acc.reshape(TH, W, CG).astype(o_ref.dtype)

    # Fused torch.cat((x, out), channel axis): one full-block store.
    # TODO(synk): C/CG are rarely 128-lane multiples; the concat+store is still
    # sub-lane-dense, a channel-padded fused layout would fix that.
    o_ref[0] = jnp.concatenate([x_mid.astype(o_ref.dtype), conv], axis=-1)


def _pick_row_tile(H, W, C, CI, CG, budget_bytes):
    """Largest row tile whose per-step VMEM working set fits budget_bytes
    (lane/sublane padding included; bf16 activations/weights, f32 I/O)."""
    def est(th):
        f32, b16, lane = 4, 2, 128
        xin  = 2 * th * _round_up(W, 8) * _round_up(C, lane) * f32          # dbl-buffered
        halo = 4 * _round_up(W, 8) * _round_up(C, lane) * f32               # 2 halos x 2 bufs
        out  = 2 * th * _round_up(W, 8) * _round_up(C + CG, lane) * f32
        hpad = (th + 2) * _round_up(W + 2, 16) * _round_up(CI, lane) * b16
        wide = (th + 2) * _round_up(W, 16) * _round_up(3 * CI, lane) * b16  # in-kernel temp
        acc  = _round_up(th * W, 8) * _round_up(CG, lane) * f32
        wgt  = (_round_up(C, 16) * _round_up(CI, lane)
                + 3 * _round_up(3 * CI, 16) * _round_up(CG, lane)) * b16
        return xin + halo + out + hpad + wide + acc + wgt

    th_max = 1
    for th in range(min(H, 256), 0, -1):
        if est(th) <= budget_bytes:
            th_max = th
            break
    hb = pl.cdiv(H, th_max)
    th = pl.cdiv(H, hb)            # balance rows across row-blocks
    if H % th != 0:
        # Prefer an exact divisor of H when one is nearly as large (avoids the
        # ragged last tile entirely for common image sizes).
        divs = [d for d in range(th_max, 0, -1) if H % d == 0]
        if divs and divs[0] * 4 >= th * 3:
            th = divs[0]
    return th


def bottleneck_forward(x_nchw, params, eps=1e-5, use_bf16=True,
                       vmem_budget_bytes=20 * 1024 * 1024):
    N, C, H, W = x_nchw.shape
    CI = params["w1"].shape[1]      # interChannels
    CG = params["w2"].shape[-1]     # growthRate
    cdt = jnp.bfloat16 if use_bf16 else jnp.float32

    TH = _pick_row_tile(H, W, C, CI, CG, vmem_budget_bytes)
    HB = pl.cdiv(H, TH)

    # TODO(synk): NCHW<->NHWC transposes remain standalone XLA passes.
    x_nhwc = jnp.transpose(x_nchw, (0, 2, 3, 1)).astype(jnp.float32)

    # Fold BN running stats into scale/shift (inference-mode BN).
    s1 = params["g1"] / jnp.sqrt(params["v1"] + eps)
    sh1 = params["b1"] - params["m1"] * s1
    s2 = params["g2"] / jnp.sqrt(params["v2"] + eps)
    sh2 = params["b2"] - params["m2"] * s2

    w1c = params["w1"].astype(cdt)                          # (C, CI)
    w2c = params["w2"].reshape(3, 3 * CI, CG).astype(cdt)   # row index = kx*CI + ci

    kernel = functools.partial(bottleneck_fused_kernel,
                               TH=TH, H=H, W=W, C=C, CI=CI, CG=CG, cdt=cdt)

    flops = 2 * N * (H + 2 * HB) * W * C * CI + 2 * N * H * W * 9 * CI * CG
    bytes_accessed = (4 * N * H * W * C                  # x mid tiles
                      + 4 * N * HB * 2 * W * C           # halo re-reads
                      + 4 * N * H * W * (C + CG)         # output
                      + w1c.size * w1c.dtype.itemsize
                      + w2c.size * w2c.dtype.itemsize
                      + 4 * (2 * C + 2 * CI))
    cost = pl.CostEstimate(flops=flops, transcendentals=0,
                           bytes_accessed=bytes_accessed)

    y_nhwc = pl.pallas_call(
        kernel,
        out_shape=jax.ShapeDtypeStruct((N, H, W, C + CG), jnp.float32),
        grid=(N, HB),
        in_specs=[
            # interior rows of this tile
            pl.BlockSpec((1, TH, W, C), lambda n, i: (n, i, 0, 0)),
            # top / bottom halo rows (block size 1 along H -> block idx == row)
            pl.BlockSpec((1, 1, W, C),
                         lambda n, i: (n, jnp.maximum(i * TH - 1, 0), 0, 0)),
            pl.BlockSpec((1, 1, W, C),
                         lambda n, i: (n, jnp.minimum(i * TH + TH, H - 1), 0, 0)),
            # folded BN params + weights: full blocks, resident in VMEM
            pl.BlockSpec((1, C), lambda n, i: (0, 0)),
            pl.BlockSpec((1, C), lambda n, i: (0, 0)),
            pl.BlockSpec((C, CI), lambda n, i: (0, 0)),
            pl.BlockSpec((1, CI), lambda n, i: (0, 0)),
            pl.BlockSpec((1, CI), lambda n, i: (0, 0)),
            pl.BlockSpec((3, 3 * CI, CG), lambda n, i: (0, 0, 0)),
        ],
        out_specs=pl.BlockSpec((1, TH, W, C + CG), lambda n, i: (n, i, 0, 0)),
        scratch_shapes=[pltpu.VMEM((TH + 2, W + 2, CI), cdt)],
        compiler_params=pltpu.CompilerParams(
            dimension_semantics=("parallel", "parallel"),
            vmem_limit_bytes=48 * 1024 * 1024),
        cost_estimate=cost,
    )(x_nhwc, x_nhwc, x_nhwc,
      s1.reshape(1, C), sh1.reshape(1, C), w1c,
      s2.reshape(1, CI), sh2.reshape(1, CI), w2c)

    return jnp.transpose(y_nhwc, (0, 3, 1, 2))


def make_params(key, nChannels, growthRate):
    interChannels = 4 * growthRate
    ks = jax.random.split(key, 10)
    p = {}
    # conv1: PyTorch (interC, C, 1, 1) -> (C, interC)
    p["w1"] = jax.random.normal(ks[0], (nChannels, interChannels), jnp.float32) * 0.1
    # conv2: PyTorch (growth, interC, 3, 3) -> HWIO (3, 3, interC, growth)
    p["w2"] = jax.random.normal(ks[1], (3, 3, interChannels, growthRate), jnp.float32) * 0.1
    p["g1"] = jax.random.uniform(ks[2], (nChannels,), jnp.float32, 0.5, 1.5)
    p["b1"] = jax.random.normal(ks[3], (nChannels,), jnp.float32) * 0.1
    p["m1"] = jax.random.normal(ks[4], (nChannels,), jnp.float32) * 0.1
    p["v1"] = jax.random.uniform(ks[5], (nChannels,), jnp.float32, 0.5, 1.5)
    p["g2"] = jax.random.uniform(ks[6], (interChannels,), jnp.float32, 0.5, 1.5)
    p["b2"] = jax.random.normal(ks[7], (interChannels,), jnp.float32) * 0.1
    p["m2"] = jax.random.normal(ks[8], (interChannels,), jnp.float32) * 0.1
    p["v2"] = jax.random.uniform(ks[9], (interChannels,), jnp.float32, 0.5, 1.5)
    return p


def bottleneck_reference(x_nchw, params, eps=1e-5, use_bf16=True):
    """Pure-JAX reference mirroring the kernel's bf16-at-the-MXU numerics."""
    cdt = jnp.bfloat16 if use_bf16 else jnp.float32
    x = jnp.transpose(x_nchw, (0, 2, 3, 1)).astype(jnp.float32)
    s1 = params["g1"] / jnp.sqrt(params["v1"] + eps)
    sh1 = params["b1"] - params["m1"] * s1
    s2 = params["g2"] / jnp.sqrt(params["v2"] + eps)
    sh2 = params["b2"] - params["m2"] * s2
    t = jnp.maximum(x * s1 + sh1, 0.0)
    h = jnp.einsum("nhwc,cd->nhwd", t.astype(cdt), params["w1"].astype(cdt),
                   preferred_element_type=jnp.float32)
    h = jnp.maximum(h * s2 + sh2, 0.0)
    out = jax.lax.conv_general_dilated(
        h.astype(cdt), params["w2"].astype(cdt),
        window_strides=(1, 1), padding="SAME",
        dimension_numbers=("NHWC", "HWIO", "NHWC"),
        preferred_element_type=jnp.float32)
    y = jnp.concatenate([x, out], axis=-1)
    return jnp.transpose(y, (0, 3, 1, 2))


if __name__ == "__main__":
    nChannels, growthRate = 4, 4
    N, H, W = 2, 16, 16

    key = jax.random.PRNGKey(0)
    kx, kp = jax.random.split(key)
    x = jax.random.normal(kx, (N, nChannels, H, W), jnp.float32)
    params = make_params(kp, nChannels, growthRate)

    y = jax.block_until_ready(bottleneck_forward(x, params))
    y_ref = bottleneck_reference(x, params)

    assert y.shape == (N, nChannels + growthRate, H, W), y.shape
    assert jnp.allclose(y, y_ref, atol=2e-3, rtol=2e-3), \
        float(jnp.max(jnp.abs(y - y_ref)))

    print("KERNEL_OK")
</pallas_src>

<mosaic_0001>
module attributes {stable_mosaic.version = 11 : i64} {
  func.func @bottleneck_fused_kernel(%arg0: i32, %arg1: i32, %arg2: memref<1x16x16x4xf32, #tpu.memory_space<vmem>>, %arg3: memref<1x1x16x4xf32, #tpu.memory_space<vmem>>, %arg4: memref<1x1x16x4xf32, #tpu.memory_space<vmem>>, %arg5: memref<1x4xf32, #tpu.memory_space<vmem>>, %arg6: memref<1x4xf32, #tpu.memory_space<vmem>>, %arg7: memref<4x16xbf16, #tpu.memory_space<vmem>>, %arg8: memref<1x16xf32, #tpu.memory_space<vmem>>, %arg9: memref<1x16xf32, #tpu.memory_space<vmem>>, %arg10: memref<3x48x4xbf16, #tpu.memory_space<vmem>>, %arg11: memref<1x16x16x8xf32, #tpu.memory_space<vmem>>, %arg12: memref<18x18x16xbf16, #tpu.memory_space<vmem>>) attributes {dimension_semantics = [#tpu.dimension_semantics<parallel>, #tpu.dimension_semantics<parallel>], iteration_bounds = array<i64: 2, 1>, scalar_prefetch = 0 : i64, scratch_operands = 1 : i64, tpu.core_type = #tpu.core_type<tc>, window_params = [{transform_indices = @transform_0, window_bounds = array<i64: 1, 16, 16, 4>}, {transform_indices = @transform_1, window_bounds = array<i64: 1, 1, 16, 4>}, {transform_indices = @transform_2, window_bounds = array<i64: 1, 1, 16, 4>}, {pipeline_mode = #tpu.pipeline_mode<synchronous>, transform_indices = @transform_3, window_bounds = array<i64: 1, 4>}, {pipeline_mode = #tpu.pipeline_mode<synchronous>, transform_indices = @transform_4, window_bounds = array<i64: 1, 4>}, {pipeline_mode = #tpu.pipeline_mode<synchronous>, transform_indices = @transform_5, window_bounds = array<i64: 4, 16>}, {pipeline_mode = #tpu.pipeline_mode<synchronous>, transform_indices = @transform_6, window_bounds = array<i64: 1, 16>}, {pipeline_mode = #tpu.pipeline_mode<synchronous>, transform_indices = @transform_7, window_bounds = array<i64: 1, 16>}, {pipeline_mode = #tpu.pipeline_mode<synchronous>, transform_indices = @transform_8, window_bounds = array<i64: 3, 48, 4>}, {transform_indices = @transform_9, window_bounds = array<i64: 1, 16, 16, 8>}]} {
    %c0 = arith.constant 0 : index
    %c0_0 = arith.constant 0 : index
    %c0_1 = arith.constant 0 : index
    %c0_2 = arith.constant 0 : index
    %0 = vector.load %arg2[%c0, %c0_0, %c0_1, %c0_2] : memref<1x16x16x4xf32, #tpu.memory_space<vmem>>, vector<1x16x16x4xf32>
    %1 = vector.shape_cast %0 : vector<1x16x16x4xf32> to vector<16x16x4xf32>
    %c0_3 = arith.constant 0 : index
    %c0_4 = arith.constant 0 : index
    %c0_5 = arith.constant 0 : index
    %c0_6 = arith.constant 0 : index
    %2 = vector.load %arg3[%c0_3, %c0_4, %c0_5, %c0_6] : memref<1x1x16x4xf32, #tpu.memory_space<vmem>>, vector<1x1x16x4xf32>
    %3 = vector.shape_cast %2 : vector<1x1x16x4xf32> to vector<16x4xf32>
    %4 = vector.shape_cast %3 : vector<16x4xf32> to vector<1x16x4xf32>
    %c0_7 = arith.constant 0 : index
    %c0_8 = arith.constant 0 : index
    %c0_9 = arith.constant 0 : index
    %c0_10 = arith.constant 0 : index
    %5 = vector.load %arg4[%c0_7, %c0_8, %c0_9, %c0_10] : memref<1x1x16x4xf32, #tpu.memory_space<vmem>>, vector<1x1x16x4xf32>
    %6 = vector.shape_cast %5 : vector<1x1x16x4xf32> to vector<16x4xf32>
    %7 = vector.shape_cast %6 : vector<16x4xf32> to vector<1x16x4xf32>
    %8 = tpu.concatenate %4, %1, %7 in 0 : vector<1x16x4xf32>, vector<16x16x4xf32>, vector<1x16x4xf32> -> vector<18x16x4xf32>
    %9 = vector.shape_cast %8 : vector<18x16x4xf32> to vector<288x4xf32>
    %c0_11 = arith.constant 0 : index
    %c0_12 = arith.constant 0 : index
    %10 = vector.load %arg5[%c0_11, %c0_12] : memref<1x4xf32, #tpu.memory_space<vmem>>, vector<1x4xf32>
    %11 = vector.broadcast %10 : vector<1x4xf32> to vector<288x4xf32>
    %12 = arith.mulf %9, %11 : vector<288x4xf32>
    %c0_13 = arith.constant 0 : index
    %c0_14 = arith.constant 0 : index
    %13 = vector.load %arg6[%c0_13, %c0_14] : memref<1x4xf32, #tpu.memory_space<vmem>>, vector<1x4xf32>
    %14 = vector.broadcast %13 : vector<1x4xf32> to vector<288x4xf32>
    %15 = arith.addf %12, %14 : vector<288x4xf32>
    %cst = arith.constant 0.000000e+00 : f32
    %16 = vector.broadcast %cst : f32 to vector<288x4xf32>
    %17 = arith.maximumf %15, %16 : vector<288x4xf32>
    %18 = arith.truncf %17 : vector<288x4xf32> to vector<288x4xbf16>
    %c0_15 = arith.constant 0 : index
    %c0_16 = arith.constant 0 : index
    %19 = vector.load %arg7[%c0_15, %c0_16] : memref<4x16xbf16, #tpu.memory_space<vmem>>, vector<4x16xbf16>
    %cst_17 = arith.constant dense<0.000000e+00> : vector<288x16xf32>
    %20 = tpu.matmul %18, %19, %cst_17 {dimension_numbers = #tpu.dot_dimension_numbers<[1], [0], [0], [1], [0, 0, 1, 1], [], []>} : vector<288x4xbf16>, vector<4x16xbf16>, vector<288x16xf32> -> vector<288x16xf32>
    %c0_18 = arith.constant 0 : index
    %c0_19 = arith.constant 0 : index
    %21 = vector.load %arg8[%c0_18, %c0_19] : memref<1x16xf32, #tpu.memory_space<vmem>>, vector<1x16xf32>
    %22 = vector.broadcast %21 : vector<1x16xf32> to vector<288x16xf32>
    %23 = arith.mulf %20, %22 : vector<288x16xf32>
    %c0_20 = arith.constant 0 : index
    %c0_21 = arith.constant 0 : index
    %24 = vector.load %arg9[%c0_20, %c0_21] : memref<1x16xf32, #tpu.memory_space<vmem>>, vector<1x16xf32>
    %25 = vector.broadcast %24 : vector<1x16xf32> to vector<288x16xf32>
    %26 = arith.addf %23, %25 : vector<288x16xf32>
    %cst_22 = arith.constant 0.000000e+00 : f32
    %27 = vector.broadcast %cst_22 : f32 to vector<288x16xf32>
    %28 = arith.maximumf %26, %27 : vector<288x16xf32>
    %29 = arith.truncf %28 : vector<288x16xf32> to vector<288x16xbf16>
    %30 = vector.shape_cast %29 : vector<288x16xbf16> to vector<18x16x16xbf16>
    %31 = tpu.iota {dimensions = array<i32: 0>} : vector<18x1xi32>
    %c16_i32 = arith.constant 16 : i32
    %32 = arith.muli %arg1, %c16_i32 : i32
    %c1_i32 = arith.constant 1 : i32
    %33 = arith.subi %32, %c1_i32 : i32
    %34 = vector.broadcast %33 : i32 to vector<18x1xi32>
    %35 = arith.addi %31, %34 : vector<18x1xi32>
    %c0_i32 = arith.constant 0 : i32
    %36 = vector.broadcast %c0_i32 : i32 to vector<18x1xi32>
    %37 = arith.cmpi sge, %35, %36 : vector<18x1xi32>
    %c16_i32_23 = arith.constant 16 : i32
    %38 = vector.broadcast %c16_i32_23 : i32 to vector<18x1xi32>
    %39 = arith.cmpi slt, %35, %38 : vector<18x1xi32>
    %40 = arith.andi %37, %39 : vector<18x1xi1>
    %41 = vector.shape_cast %40 : vector<18x1xi1> to vector<18x1x1xi1>
    %cst_24 = arith.constant 0.000000e+00 : bf16
    %42 = vector.broadcast %cst_24 : bf16 to vector<18x16x16xbf16>
    %43 = vector.shape_cast %41 : vector<18x1x1xi1> to vector<18x1x1xi1>
    %44 = vector.broadcast %43 : vector<18x1x1xi1> to vector<18x16x16xi1>
    %45 = arith.select %44, %30, %42 : vector<18x16x16xi1>, vector<18x16x16xbf16>
    %cst_25 = arith.constant 0.000000e+00 : bf16
    %46 = vector.broadcast %cst_25 : bf16 to vector<18x1x16xbf16>
    %47 = tpu.concatenate %46, %45, %46 in 1 : vector<18x1x16xbf16>, vector<18x16x16xbf16>, vector<18x1x16xbf16> -> vector<18x18x16xbf16>
    %c0_26 = arith.constant 0 : index
    %c0_27 = arith.constant 0 : index
    %c0_28 = arith.constant 0 : index
    %48 = vector.load %arg12[%c0_26, %c0_27, %c0_28] : memref<18x18x16xbf16, #tpu.memory_space<vmem>>, vector<18x18x16xbf16>
    tpu.vector_store %arg12[%c0_26, %c0_27, %c0_28], %47 {strides = array<i32>} : memref<18x18x16xbf16, #tpu.memory_space<vmem>>, vector<18x18x16xbf16>,
    %c0_29 = arith.constant 0 : index
    %c0_30 = arith.constant 0 : index
    %c0_31 = arith.constant 0 : index
    %49 = vector.load %arg12[%c0_29, %c0_30, %c0_31] : memref<18x18x16xbf16, #tpu.memory_space<vmem>>, vector<18x16x16xbf16>
    %c0_32 = arith.constant 0 : index
    %c1 = arith.constant 1 : index
    %c0_33 = arith.constant 0 : index
    %50 = vector.load %arg12[%c0_32, %c1, %c0_33] : memref<18x18x16xbf16, #tpu.memory_space<vmem>>, vector<18x16x16xbf16>
    %c0_34 = arith.constant 0 : index
    %c2 = arith.constant 2 : index
    %c0_35 = arith.constant 0 : index
    %51 = vector.load %arg12[%c0_34, %c2, %c0_35] : memref<18x18x16xbf16, #tpu.memory_space<vmem>>, vector<18x16x16xbf16>
    %52 = tpu.concatenate %49, %50, %51 in 2 : vector<18x16x16xbf16>, vector<18x16x16xbf16>, vector<18x16x16xbf16> -> vector<18x16x48xbf16>
    %53 = vector.extract_strided_slice %52 {offsets = [0, 0, 0], sizes = [16, 16, 48], strides = [1, 1, 1]} : vector<18x16x48xbf16> to vector<16x16x48xbf16>
    %54 = vector.shape_cast %53 : vector<16x16x48xbf16> to vector<256x48xbf16>
    %c0_36 = arith.constant 0 : index
    %c0_37 = arith.constant 0 : index
    %c0_38 = arith.constant 0 : index
    %55 = vector.load %arg10[%c0_36, %c0_37, %c0_38] : memref<3x48x4xbf16, #tpu.memory_space<vmem>>, vector<1x48x4xbf16>
    %56 = vector.shape_cast %55 : vector<1x48x4xbf16> to vector<48x4xbf16>
    %cst_39 = arith.constant dense<0.000000e+00> : vector<256x4xf32>
    %57 = tpu.matmul %54, %56, %cst_39 {dimension_numbers = #tpu.dot_dimension_numbers<[1], [0], [0], [1], [0, 0, 1, 1], [], []>} : vector<256x48xbf16>, vector<48x4xbf16>, vector<256x4xf32> -> vector<256x4xf32>
    %58 = vector.extract_strided_slice %52 {offsets = [1, 0, 0], sizes = [16, 16, 48], strides = [1, 1, 1]} : vector<18x16x48xbf16> to vector<16x16x48xbf16>
    %59 = vector.shape_cast %58 : vector<16x16x48xbf16> to vector<256x48xbf16>
    %c1_40 = arith.constant 1 : index
    %c0_41 = arith.constant 0 : index
    %c0_42 = arith.constant 0 : index
    %60 = vector.load %arg10[%c1_40, %c0_41, %c0_42] : memref<3x48x4xbf16, #tpu.memory_space<vmem>>, vector<1x48x4xbf16>
    %61 = vector.shape_cast %60 : vector<1x48x4xbf16> to vector<48x4xbf16>
    %cst_43 = arith.constant dense<0.000000e+00> : vector<256x4xf32>
    %62 = tpu.matmul %59, %61, %cst_43 {dimension_numbers = #tpu.dot_dimension_numbers<[1], [0], [0], [1], [0, 0, 1, 1], [], []>} : vector<256x48xbf16>, vector<48x4xbf16>, vector<256x4xf32> -> vector<256x4xf32>
    %63 = arith.addf %57, %62 : vector<256x4xf32>
    %64 = vector.extract_strided_slice %52 {offsets = [2, 0, 0], sizes = [16, 16, 48], strides = [1, 1, 1]} : vector<18x16x48xbf16> to vector<16x16x48xbf16>
    %65 = vector.shape_cast %64 : vector<16x16x48xbf16> to vector<256x48xbf16>
    %c2_44 = arith.constant 2 : index
    %c0_45 = arith.constant 0 : index
    %c0_46 = arith.constant 0 : index
    %66 = vector.load %arg10[%c2_44, %c0_45, %c0_46] : memref<3x48x4xbf16, #tpu.memory_space<vmem>>, vector<1x48x4xbf16>
    %67 = vector.shape_cast %66 : vector<1x48x4xbf16> to vector<48x4xbf16>
    %cst_47 = arith.constant dense<0.000000e+00> : vector<256x4xf32>
    %68 = tpu.matmul %65, %67, %cst_47 {dimension_numbers = #tpu.dot_dimension_numbers<[1], [0], [0], [1], [0, 0, 1, 1], [], []>} : vector<256x48xbf16>, vector<48x4xbf16>, vector<256x4xf32> -> vector<256x4xf32>
    %69 = arith.addf %63, %68 : vector<256x4xf32>
    %70 = vector.shape_cast %69 : vector<256x4xf32> to vector<16x16x4xf32>
    %71 = tpu.concatenate %1, %70 in 2 : vector<16x16x4xf32>, vector<16x16x4xf32> -> vector<16x16x8xf32>
    %c0_48 = arith.constant 0 : index
    %c0_49 = arith.constant 0 : index
    %c0_50 = arith.constant 0 : index
    %c0_51 = arith.constant 0 : index
    %72 = vector.load %arg11[%c0_48, %c0_49, %c0_50, %c0_51] : memref<1x16x16x8xf32, #tpu.memory_space<vmem>>, vector<1x16x16x8xf32>
    %73 = vector.shape_cast %72 : vector<1x16x16x8xf32> to vector<16x16x8xf32>
    %74 = vector.shape_cast %71 : vector<16x16x8xf32> to vector<1x16x16x8xf32>
    tpu.vector_store %arg11[%c0_48, %c0_49, %c0_50, %c0_51], %74 {strides = array<i32>} : memref<1x16x16x8xf32, #tpu.memory_space<vmem>>, vector<1x16x16x8xf32>,
    return
  }
  func.func @transform_0(%arg0: i32, %arg1: i32) -> (i32, i32, i32, i32) {
    %c0_i32 = arith.constant 0 : i32
    %c0_i32_0 = arith.constant 0 : i32
    %c0_i32_1 = arith.constant 0 : i32
    return %arg0, %arg1, %c0_i32, %c0_i32_0 : i32, i32, i32, i32
  }
  func.func @transform_1(%arg0: i32, %arg1: i32) -> (i32, i32, i32, i32) {
    %c16_i32 = arith.constant 16 : i32
    %0 = arith.muli %arg1, %c16_i32 : i32
    %c1_i32 = arith.constant 1 : i32
    %1 = arith.subi %0, %c1_i32 : i32
    %c0_i32 = arith.constant 0 : i32
    %2 = arith.maxsi %1, %c0_i32 : i32
    %c0_i32_0 = arith.constant 0 : i32
    %c0_i32_1 = arith.constant 0 : i32
    %c0_i32_2 = arith.constant 0 : i32
    return %arg0, %2, %c0_i32_0, %c0_i32_1 : i32, i32, i32, i32
  }
  func.func @transform_2(%arg0: i32, %arg1: i32) -> (i32, i32, i32, i32) {
    %c16_i32 = arith.constant 16 : i32
    %0 = arith.muli %arg1, %c16_i32 : i32
    %c16_i32_0 = arith.constant 16 : i32
    %1 = arith.addi %0, %c16_i32_0 : i32
    %c15_i32 = arith.constant 15 : i32
    %2 = arith.minsi %1, %c15_i32 : i32
    %c0_i32 = arith.constant 0 : i32
    %c0_i32_1 = arith.constant 0 : i32
    %c0_i32_2 = arith.constant 0 : i32
    return %arg0, %2, %c0_i32, %c0_i32_1 : i32, i32, i32, i32
  }
  func.func @transform_3(%arg0: i32, %arg1: i32) -> (i32, i32) {
    %c0_i32 = arith.constant 0 : i32
    %c0_i32_0 = arith.constant 0 : i32
    %c0_i32_1 = arith.constant 0 : i32
    return %c0_i32, %c0_i32_0 : i32, i32
  }
  func.func @transform_4(%arg0: i32, %arg1: i32) -> (i32, i32) {
    %c0_i32 = arith.constant 0 : i32
    %c0_i32_0 = arith.constant 0 : i32
    %c0_i32_1 = arith.constant 0 : i32
    return %c0_i32, %c0_i32_0 : i32, i32
  }
  func.func @transform_5(%arg0: i32, %arg1: i32) -> (i32, i32) {
    %c0_i32 = arith.constant 0 : i32
    %c0_i32_0 = arith.constant 0 : i32
    %c0_i32_1 = arith.constant 0 : i32
    return %c0_i32, %c0_i32_0 : i32, i32
  }
  func.func @transform_6(%arg0: i32, %arg1: i32) -> (i32, i32) {
    %c0_i32 = arith.constant 0 : i32
    %c0_i32_0 = arith.constant 0 : i32
    %c0_i32_1 = arith.constant 0 : i32
    return %c0_i32, %c0_i32_0 : i32, i32
  }
  func.func @transform_7(%arg0: i32, %arg1: i32) -> (i32, i32) {
    %c0_i32 = arith.constant 0 : i32
    %c0_i32_0 = arith.constant 0 : i32
    %c0_i32_1 = arith.constant 0 : i32
    return %c0_i32, %c0_i32_0 : i32, i32
  }
  func.func @transform_8(%arg0: i32, %arg1: i32) -> (i32, i32, i32) {
    %c0_i32 = arith.constant 0 : i32
    %c0_i32_0 = arith.constant 0 : i32
    %c0_i32_1 = arith.constant 0 : i32
    %c0_i32_2 = arith.constant 0 : i32
    return %c0_i32, %c0_i32_0, %c0_i32_1 : i32, i32, i32
  }
  func.func @transform_9(%arg0: i32, %arg1: i32) -> (i32, i32, i32, i32) {
    %c0_i32 = arith.constant 0 : i32
    %c0_i32_0 = arith.constant 0 : i32
    %c0_i32_1 = arith.constant 0 : i32
    return %arg0, %arg1, %c0_i32, %c0_i32_0 : i32, i32, i32, i32
  }
}

</mosaic_0001>

<bundles_post_ra>
// kernel: tpu_custom_call.1
= control target key start
LH: loop header
LB: loop body
LE: loop exit
PB: predicated region body
PF: predicated region fallthrough
CT: control target
= control target key end

     0   :  { %s3970_s30 = smov 0   ;;  %s3972_s10 = smov 0   ;;  %s5172_s0 = inlined_call_operand.vmem [shape: f32[2,16,16,4], index: 0, kind: input, shape index: {}]   ;;  %s5173_s1 = inlined_call_operand.vmem [shape: f32[2,16,16,4], index: 1, kind: input, shape index: {}]   ;;  %s5174_s2 = inlined_call_operand.vmem [shape: f32[2,16,16,4], index: 2, kind: input, shape index: {}]   ;;  %s5175_s3 = inlined_call_operand.vmem [shape: f32[1,4], index: 3, kind: input, shape index: {}]   ;;  %s5176_s4 = inlined_call_operand.vmem [shape: f32[1,4], index: 4, kind: input, shape index: {}]   ;;  %s5177_s5 = inlined_call_operand.vmem [shape: bf16[4,16], index: 5, kind: input, shape index: {}]   ;;  %s5178_s6 = inlined_call_operand.vmem [shape: f32[1,16], index: 6, kind: input, shape index: {}]   ;;  %s5179_s7 = inlined_call_operand.vmem [shape: f32[1,16], index: 7, kind: input, shape index: {}]   ;;  %s5180_s8 = inlined_call_operand.vmem [shape: bf16[3,48,4], index: 8, kind: input, shape index: {}]   ;;  %s5181_s9 = inlined_call_operand.vmem [shape: f32[2,16,16,8], index: 9, kind: output, shape index: {}]  }
   0x1   :  { %s3974_s11 = smov 0  }
   0x2 LB: > { %s31_s12 = sadd.s32 1, %s3909_s10  ;;  %p3325_p0 = scmp.ge.s32.totalorder %s3913_s11, 1  ;;  %s3913_s11 = sphi %s3974_s11, %s19_s11   ;;  %s3909_s10 = sphi %s3972_s10, %s5193_s10   ;;  %s3905_s30 = sphi %s3970_s30, %s5192_s30  }
   0x3   : > { %p33_p1 = scmp.ge.s32.totalorder %s31_s12, 2  ;;  %p373_p2 = scmp.lt.s32.totalorder %s3913_s11, 3 }
   0x5   : > { %s5195_s12 = smov (%p33_p1, %s31_s12), 0  ;;  %p374_p3 = pnand %p3325_p0, %p373_p2 }
   0x6   : > { %p446_p4 = scmp.lt.s32.totalorder (!%p374_p3), %s3905_s30, 1  ;;  %s3917_s24 = smov (!%p374_p3), 32  }
   0x7   : > { %377 = sbr.rel (%p374_p3) target bundleno = 869 (0x365), region = 56  ;;  %s3918_s27 = smov (!%p374_p3), 16  }
   0xc   : > { %v678_v0 = vld [vmem:[%s5177_s5] sm:$0x3]  ;;  %vm734_vm0 = vcmask 1041408   ;;  %s5197_s30 = smov (!%p446_p4, %s3905_s30), 1  ;;  %vm679_vm1 = vcmask 31744   ;;  %vm1383_vm4 = vcmask 1040384  }
   0xd   : > { %3769 = vmatprep.subr.msk.bf16.mxu0 %vm734_vm0, %v678_v0  ;;  %v736_v1 = vsel %vm734_vm0, %v678_v0, 0  ;;  %v3994_v2 = vld [vmem:[%s5175_s3] ss:$0 sm:$0xff]  ;;  %s3996_s17 = sshll.u32 %s5197_s30, 8  ;;  %vm1384_vm6 = vsmask.f32 256 }
   0xe   : > { %3618 = vmatpush3.bf16.msra.mxu0 %v736_v1  ;;  %v4001_v3 = vld [vmem:[%s5176_s4] ss:$0 sm:$0xff]  ;;  %s4007_s22 = scalar_lea.vmem %s5172_s0, %s3996_s17  ;;  %s468_s25 = scalar_lea.vmem %s5173_s1, %s3996_s17  ;;  %vm1623_vm7 = vcmask 122880   ;;  %vm1620_vm9 = vcmask 125952   ;;  %vm4225_vm12 = vmand %vm1383_vm4, %vm1384_vm6  ;;  %vm1892_vm4 = vsmask.f32 7424 }
   0xf   : > { %v534_v4 = vld [vmem:[%s468_s25] sm:$0xff]  ;;  %v535_v5 = vld [vmem:[%s468_s25 + $0x8] sm:$0xff]  ;;  %v504_v11 = vld [vmem:[%s4007_s22 + $0x10] sm:$0xff]  ;;  %s3538_s26 = sadd.s32 240, %s3996_s17 }
  0x10   : > { %v502_v6 = vld [vmem:[%s4007_s22] sm:$0xff]  ;;  %v545_v7 = vmul.f32 %v3994_v2, %v534_v4  ;;  %v546_v8 = vmul.f32 %v3994_v2, %v535_v5  ;;  %v503_v9 = vld [vmem:[%s4007_s22 + $0x8] sm:$0xff]  ;;  %v505_v12 = vld [vmem:[%s4007_s22 + $0x18] sm:$0xff]  ;;  %v549_v14 = vmul.f32 %v3994_v2, %v504_v11  ;;  %s485_s29 = scalar_lea.vmem %s5174_s2, %s3538_s26  ;;  %s3919_s26 = smov 4  }
  0x11   : > { %v547_v10 = vmul.f32 %v3994_v2, %v502_v6  ;;  %v548_v13 = vmul.f32 %v3994_v2, %v503_v9  ;;  %v550_v15 = vmul.f32 %v3994_v2, %v505_v12  ;;  %v506_v16 = vld [vmem:[%s4007_s22 + $0x20] sm:$0xff]  ;;  %v507_v17 = vld [vmem:[%s4007_s22 + $0x28] sm:$0xff]  ;;  %v508_v26 = vld [vmem:[%s4007_s22 + $0x30] sm:$0xff] }
  0x12   : > { %v588_v18 = vadd.f32 %v4001_v3, %v545_v7  ;;  %v589_v19 = vadd.f32 %v4001_v3, %v546_v8  ;;  %v551_v21 = vmul.f32 %v3994_v2, %v506_v16  ;;  %v592_v23 = vadd.f32 %v4001_v3, %v549_v14  ;;  %v509_v27 = vld [vmem:[%s4007_s22 + $0x38] sm:$0xff]  ;;  %v510_v39 = vld [vmem:[%s4007_s22 + $0x40] sm:$0xff]  ;;  %v511_v40 = vld [vmem:[%s4007_s22 + $0x48] sm:$0xff] }
  0x13   : > { %v590_v20 = vadd.f32 %v4001_v3, %v547_v10  ;;  %v591_v22 = vadd.f32 %v4001_v3, %v548_v13  ;;  %v593_v24 = vadd.f32 %v4001_v3, %v550_v15  ;;  %v552_v25 = vmul.f32 %v3994_v2, %v507_v17  ;;  %v512_v43 = vld [vmem:[%s4007_s22 + $0x50] sm:$0xff]  ;;  %v513_v44 = vld [vmem:[%s4007_s22 + $0x58] sm:$0xff]  ;;  %v514_v58 = vld [vmem:[%s4007_s22 + $0x60] sm:$0xff] }
  0x14   : > { %v624_v28 = vmax.f32 %v588_v18, 0.0  ;;  %v625_v29 = vmax.f32 %v589_v19, 0.0  ;;  %v594_v31 = vadd.f32 %v4001_v3, %v551_v21  ;;  %v628_v33 = vmax.f32 %v592_v23, 0.0  ;;  %v515_v62 = vld [vmem:[%s4007_s22 + $0x68] sm:$0xff]  ;;  %v516_v63 = vld [vmem:[%s4007_s22 + $0x70] sm:$0xff]  ;;  %v517_v0 = vld [vmem:[%s4007_s22 + $0x78] sm:$0xff] }
  0x15   : > { %v626_v30 = vmax.f32 %v590_v20, 0.0  ;;  %v627_v32 = vmax.f32 %v591_v22, 0.0  ;;  %v629_v34 = vmax.f32 %v593_v24, 0.0  ;;  %v595_v35 = vadd.f32 %v4001_v3, %v552_v25  ;;  %v518_v17 = vld [vmem:[%s4007_s22 + $0x80] sm:$0xff]  ;;  %v519_v18 = vld [vmem:[%s4007_s22 + $0x88] sm:$0xff]  ;;  %v520_v19 = vld [vmem:[%s4007_s22 + $0x90] sm:$0xff] }
  0x16   : > { %v660_v36 = vpack.c.bf16 %v625_v29, %v624_v28  ;;  %v553_v37 = vmul.f32 %v3994_v2, %v508_v26  ;;  %v554_v38 = vmul.f32 %v3994_v2, %v509_v27  ;;  %v630_v47 = vmax.f32 %v594_v31, 0.0  ;;  %v521_v20 = vld [vmem:[%s4007_s22 + $0x98] sm:$0xff]  ;;  %v536_v26 = vld [vmem:[%s485_s29] sm:$0xff]  ;;  %v537_v27 = vld [vmem:[%s485_s29 + $0x8] sm:$0xff]  ;;  %s5033_s29 = scalar_lea.vmem %s5181_s9, %s3996_s17 }
  0x17   : > { %v661_v41 = vpack.c.bf16 %v627_v32, %v626_v30  ;;  %v662_v42 = vpack.c.bf16 %v629_v34, %v628_v33  ;;  %v631_v48 = vmax.f32 %v595_v35, 0.0  ;;  %v555_v49 = vmul.f32 %v3994_v2, %v510_v39 }
  0x18   : > { %3619 = vmatprep.mubr.msk.bf16.mxu0 %vm679_vm1, %v660_v36  ;;  %v596_v45 = vadd.f32 %v4001_v3, %v553_v37  ;;  %v597_v46 = vadd.f32 %v4001_v3, %v554_v38  ;;  %v556_v50 = vmul.f32 %v3994_v2, %v511_v40  ;;  %v557_v53 = vmul.f32 %v3994_v2, %v512_v43  ;;  %v522_v37 = vld [vmem:[%s4007_s22 + $0xa0] sm:$0xff]  ;;  %v523_v40 = vld [vmem:[%s4007_s22 + $0xa8] sm:$0xff]  ;;  %v524_v43 = vld [vmem:[%s4007_s22 + $0xb0] sm:$0xff] }
  0x19   : > { %3620 = vmatmul.mubr.msk.bf16.vlgmr.msra.gmra.mxu0 %vm679_vm1, %v661_v41  ;;  %v558_v54 = vmul.f32 %v3994_v2, %v513_v44  ;;  %v663_v55 = vpack.c.bf16 %v631_v48, %v630_v47  ;;  %v598_v56 = vadd.f32 %v4001_v3, %v555_v49  ;;  %v559_v1 = vmul.f32 %v3994_v2, %v514_v58  ;;  %v525_v44 = vld [vmem:[%s4007_s22 + $0xb8] sm:$0xff] }
  0x1a   : > { %3623 = vmatprep.mubr.msk.bf16.mxu0 %vm679_vm1, %v662_v42  ;;  %v632_v51 = vmax.f32 %v596_v45, 0.0  ;;  %v633_v52 = vmax.f32 %v597_v46, 0.0  ;;  %v599_v57 = vadd.f32 %v4001_v3, %v556_v50  ;;  %v600_v60 = vadd.f32 %v4001_v3, %v557_v53 }
  0x1b   : > { %v601_v61 = vadd.f32 %v4001_v3, %v558_v54  ;;  %v634_v4 = vmax.f32 %v598_v56, 0.0  ;;  %v560_v6 = vmul.f32 %v3994_v2, %v515_v62  ;;  %v561_v9 = vmul.f32 %v3994_v2, %v516_v63  ;;  %v526_v62 = vld [vmem:[%s4007_s22 + $0xc0] sm:$0xff]  ;;  %v527_v63 = vld [vmem:[%s4007_s22 + $0xc8] sm:$0xff] }
  0x1c   : > { %v664_v59 = vpack.c.bf16 %v633_v52, %v632_v51  ;;  %v635_v5 = vmax.f32 %v599_v57, 0.0  ;;  %v636_v7 = vmax.f32 %v600_v60, 0.0  ;;  %v562_v10 = vmul.f32 %v3994_v2, %v517_v0  ;;  %v528_v0 = vld [vmem:[%s4007_s22 + $0xd0] sm:$0xff] }
  0x1d   : > { %v637_v8 = vmax.f32 %v601_v61, 0.0  ;;  %v602_v11 = vadd.f32 %v4001_v3, %v559_v1  ;;  %v603_v13 = vadd.f32 %v4001_v3, %v560_v6  ;;  %v604_v15 = vadd.f32 %v4001_v3, %v561_v9  ;;  %v529_v1 = vld [vmem:[%s4007_s22 + $0xd8] sm:$0xff] }
  0x1e   : > { %v665_v12 = vpack.c.bf16 %v635_v5, %v634_v4  ;;  %v605_v16 = vadd.f32 %v4001_v3, %v562_v10  ;;  %v563_v23 = vmul.f32 %v3994_v2, %v518_v17  ;;  %v564_v24 = vmul.f32 %v3994_v2, %v519_v18  ;;  %v530_v18 = vld [vmem:[%s4007_s22 + $0xe0] sm:$0xff] }
  0x1f   : > { %v666_v14 = vpack.c.bf16 %v637_v8, %v636_v7  ;;  %v638_v21 = vmax.f32 %v602_v11, 0.0  ;;  %v639_v22 = vmax.f32 %v603_v13, 0.0  ;;  %v565_v25 = vmul.f32 %v3994_v2, %v520_v19  ;;  %v531_v19 = vld [vmem:[%s4007_s22 + $0xe8] sm:$0xff] }
  0x20   : > { %v640_v28 = vmax.f32 %v604_v15, 0.0  ;;  %v641_v29 = vmax.f32 %v605_v16, 0.0  ;;  %v566_v30 = vmul.f32 %v3994_v2, %v521_v20  ;;  %v579_v31 = vmul.f32 %v3994_v2, %v536_v26  ;;  %v532_v20 = vld [vmem:[%s4007_s22 + $0xf0] sm:$0xff] }
  0x21   : > { %3624 = vmatmul.mubr.msk.bf16.gmra.mxu0 %vm679_vm1, %v663_v55  ;;  %v580_v32 = vmul.f32 %v3994_v2, %v537_v27  ;;  %v667_v33 = vpack.c.bf16 %v639_v22, %v638_v21  ;;  %v606_v34 = vadd.f32 %v4001_v3, %v563_v23  ;;  %v607_v35 = vadd.f32 %v4001_v3, %v564_v24  ;;  %v533_v21 = vld [vmem:[%s4007_s22 + $0xf8] sm:$0xff] }
  0x22   : > { %3627 = vmatprep.mubr.msk.bf16.mxu0 %vm679_vm1, %v664_v59  ;;  %v608_v36 = vadd.f32 %v4001_v3, %v565_v25  ;;  %v668_v38 = vpack.c.bf16 %v641_v29, %v640_v28  ;;  %v609_v39 = vadd.f32 %v4001_v3, %v566_v30  ;;  %v622_v41 = vadd.f32 %v4001_v3, %v579_v31 }
  0x23   : > { %v623_v42 = vadd.f32 %v4001_v3, %v580_v32  ;;  %v567_v45 = vmul.f32 %v3994_v2, %v522_v37  ;;  %v642_v48 = vmax.f32 %v606_v34, 0.0  ;;  %v643_v49 = vmax.f32 %v607_v35, 0.0 }
  0x24   : > { %v658_v46 = vmax.f32 %v622_v41, 0.0  ;;  %v644_v50 = vmax.f32 %v608_v36, 0.0  ;;  %v568_v51 = vmul.f32 %v3994_v2, %v523_v40  ;;  %v645_v52 = vmax.f32 %v609_v39, 0.0 }
  0x25   : > { %v659_v47 = vmax.f32 %v623_v42, 0.0  ;;  %v569_v53 = vmul.f32 %v3994_v2, %v524_v43  ;;  %v570_v54 = vmul.f32 %v3994_v2, %v525_v44  ;;  %v669_v56 = vpack.c.bf16 %v643_v49, %v642_v48 }
  0x26   : > { %v610_v57 = vadd.f32 %v4001_v3, %v567_v45  ;;  %v611_v58 = vadd.f32 %v4001_v3, %v568_v51  ;;  %v670_v59 = vpack.c.bf16 %v645_v52, %v644_v50  ;;  %v571_v6 = vmul.f32 %v3994_v2, %v526_v62  ;;  %v4160_v52 = vld [vmem:[%s5179_s7] ss:$0 sm:$0xff] }
  0x27   : > { %v677_v55 = vpack.c.bf16 %v659_v47, %v658_v46  ;;  %v612_v60 = vadd.f32 %v4001_v3, %v569_v53  ;;  %v613_v61 = vadd.f32 %v4001_v3, %v570_v54  ;;  %v572_v7 = vmul.f32 %v3994_v2, %v527_v63  ;;  %v4152_v47 = vld [vmem:[%s5178_s6] ss:$0 sm:$0xff] }
  0x28   : > { %v646_v4 = vmax.f32 %v610_v57, 0.0  ;;  %v647_v5 = vmax.f32 %v611_v58, 0.0  ;;  %v573_v10 = vmul.f32 %v3994_v2, %v528_v0  ;;  %v574_v11 = vmul.f32 %v3994_v2, %v529_v1 }
  0x29   : > { %3628 = vmatmul.mubr.msk.bf16.gmra.mxu0 %vm679_vm1, %v665_v12  ;;  %v648_v8 = vmax.f32 %v612_v60, 0.0  ;;  %v649_v9 = vmax.f32 %v613_v61, 0.0  ;;  %v614_v13 = vadd.f32 %v4001_v3, %v571_v6  ;;  %v575_v24 = vmul.f32 %v3994_v2, %v530_v18 }
  0x2a   : > { %3631 = vmatprep.mubr.msk.bf16.mxu0 %vm679_vm1, %v666_v14  ;;  %v671_v12 = vpack.c.bf16 %v647_v5, %v646_v4  ;;  %v615_v14 = vadd.f32 %v4001_v3, %v572_v7  ;;  %v616_v16 = vadd.f32 %v4001_v3, %v573_v10  ;;  %v617_v17 = vadd.f32 %v4001_v3, %v574_v11 }
  0x2b   : > { %v672_v15 = vpack.c.bf16 %v649_v9, %v648_v8  ;;  %v650_v22 = vmax.f32 %v614_v13, 0.0  ;;  %v576_v25 = vmul.f32 %v3994_v2, %v531_v19  ;;  %v577_v28 = vmul.f32 %v3994_v2, %v532_v20 }
  0x2c   : > { %v651_v23 = vmax.f32 %v615_v14, 0.0  ;;  %v652_v26 = vmax.f32 %v616_v16, 0.0  ;;  %v653_v27 = vmax.f32 %v617_v17, 0.0  ;;  %v578_v29 = vmul.f32 %v3994_v2, %v533_v21 }
  0x2d   : > { %v618_v31 = vadd.f32 %v4001_v3, %v575_v24  ;;  %v619_v32 = vadd.f32 %v4001_v3, %v576_v25  ;;  %v620_v34 = vadd.f32 %v4001_v3, %v577_v28  ;;  %v1055_v41 = vlaneseq }
  0x2e   : > { %v673_v30 = vpack.c.bf16 %v651_v23, %v650_v22  ;;  %v621_v35 = vadd.f32 %v4001_v3, %v578_v29  ;;  %v3915_v44 = vmov 0   ;;  %v3916_v23 = vmov 1  }
  0x2f   : > { %v654_v36 = vmax.f32 %v618_v31, 0.0  ;;  %v655_v37 = vmax.f32 %v619_v32, 0.0  ;;  %v4139_v42 = vshrl.u32 %v1055_v41, 7 }
  0x30   : > { %v657_v39 = vmax.f32 %v621_v35, 0.0 }
  0x31   : > { %3632 = vmatmul.mubr.msk.bf16.gmra.mxu0 %vm679_vm1, %v667_v33  ;;  %v674_v33 = vpack.c.bf16 %v653_v27, %v652_v26  ;;  %v675_v40 = vpack.c.bf16 %v655_v37, %v654_v36  ;;  %v1062_v3 = vadd.s32 4294967295, %v4139_v42  ;;  %v4143_v43 = vsub.s32 1, %v4139_v42 }
  0x32   : > { %3635 = vmatprep.mubr.msk.bf16.mxu0 %vm679_vm1, %v668_v38  ;;  %v656_v38 = vmax.f32 %v620_v34, 0.0  ;;  %v4147_v46 = vsub.s32 0, %v4139_v42  ;;  %v1087_v58 = vsub.s32 2, %v4139_v42  ;;  %v1095_v60 = vsub.s32 4, %v4139_v42 }
  0x33   : > { %vm1065_vm2 = vcmp.ge.s32.totalorder %v1062_v3, 0  ;;  %v1058_v61 = vadd.s32 16, %v4139_v42  ;;  %v1107_v5 = vsub.s32 7, %v4139_v42  ;;  %v1103_v6 = vsub.s32 6, %v4139_v42 }
  0x34   : > { %v676_v2 = vpack.c.bf16 %v657_v39, %v656_v38  ;;  %v1074_v45 = vsel %vm1065_vm2, 1, %v3915_v44  ;;  %v4200_v24 = vrot.slane %v3916_v23, %v4143_v43  ;;  %v4210_v32 = vrot.slane %v3916_v23, %v1087_v58 }
  0x35   : > { %v1084_v48 = vrot.slane %v1074_v45, %v4143_v43  ;;  %v1080_v51 = vrot.slane %v1074_v45, %v4147_v46  ;;  %v4185_v11 = vrot.slane %v1074_v45, %v1087_v58  ;;  %v4189_v13 = vrot.slane %v1074_v45, %v1095_v60 }
  0x36   : > { %v1064_v14 = vadd.s32 4294967295, %v1058_v61  ;;  %v4193_v21 = vrot.slane %v1074_v45, %v1107_v5  ;;  %v4197_v22 = vrot.slane %v1074_v45, %v1103_v6  ;;  %vm2199_vm2 = vcmask 1046528  }
  0x37   : > { %vm4163_vm3 = vcmp.ne.s32.totalorder %v1084_v48, 0  ;;  %vm4174_vm5 = vcmp.ne.s32.totalorder %v1080_v51, 0  ;;  %vm1151_vm11 = vcmp.ne.s32.totalorder %v4185_v11, 0  ;;  %vm1153_vm14 = vcmp.ne.s32.totalorder %v4189_v13, 0 }
  0x38   : > { %vm1070_vm10 = vcmp.lt.s32.totalorder %v1064_v14, 16  ;;  %vm1156_vm15 = vcmp.ne.s32.totalorder %v4193_v21, 0  ;;  %vm1155_vm0 = vcmp.ne.s32.totalorder %v4197_v22, 0 }
  0x39   : > { %3636 = vmatmul.mubr.msk.bf16.gmra.mxu0 %vm679_vm1, %v669_v56  ;;  %v1091_v56 = vsub.s32 3, %v4139_v42 }
  0x3a   : > { %3639 = vmatprep.mubr.msk.bf16.mxu0 %vm679_vm1, %v670_v59  ;;  %v1099_v59 = vsub.s32 5, %v4139_v42 }
  0x3b   : > { %v4183_v9 = vrot.slane %v1074_v45, %v1091_v56  ;;  %v4208_v31 = vrot.slane %v3916_v23, %v1091_v56 }
  0x3c   : > { %v4216_v36 = vrot.slane %v3916_v23, %v1099_v59 }
  0x3d   : > { %vm1152_vm8 = vcmp.ne.s32.totalorder %v4183_v9, 0  ;;  %vm1160_vm6 = vcmp.ne.s32.totalorder %v4208_v31, 0 }
  0x41   : > { %3640 = vmatmul.mubr.msk.bf16.gmra.mxu0 %vm679_vm1, %v671_v12  ;;  %v4187_v12 = vrot.slane %v1074_v45, %v1099_v59 }
  0x42   : > { %3643 = vmatprep.mubr.msk.bf16.mxu0 %vm679_vm1, %v672_v15 }
  0x43   : > { %vm1154_vm13 = vcmp.ne.s32.totalorder %v4187_v12, 0 }
  0x49   : > { %3644 = vmatmul.mubr.msk.bf16.gmra.mxu0 %vm679_vm1, %v673_v30  ;;  %v4206_v30 = vrot.slane %v3916_v23, %v4147_v46 }
  0x4a   : > { %3647 = vmatprep.mubr.msk.bf16.mxu0 %vm679_vm1, %v674_v33 }
  0x51   : > { %3648 = vmatmul.mubr.msk.bf16.gmra.mxu0 %vm679_vm1, %v675_v40  ;;  %v4219_v40 = vrot.slane %v3916_v23, %v1095_v60 }
  0x52   : > { %3651 = vmatprep.mubr.msk.bf16.mxu0 %vm679_vm1, %v676_v2  ;;  %v4221_v2 = vrot.slane %v3916_v23, %v1107_v5 }
  0x59   : > { %3652 = vmatmul.mubr.msk.bf16.gmra.mxu0 %vm679_vm1, %v677_v55 }
  0xd9   : > { %v3621_v49 = vpop.f32.mrf.mxu0 }
  0xda   : > { %v924_v50 = vmul.f32 %v3621_v49, %v4152_v47  ;;  %v4233_v49 = vsel %vm1070_vm10, 1, %v3915_v44  ;;  %vm1162_vm10 = vcmp.ne.s32.totalorder %v4216_v36, 0 }
  0xdb   : > { %v772_v53 = vpop.f32.mrf.mxu0  ;;  %v1148_v9 = vrot.slane %v4233_v49, %v4143_v43 }
  0xdc   : > { %v922_v54 = vmul.f32 %v4152_v47, %v772_v53  ;;  %v967_v62 = vadd.f32 %v4160_v52, %v924_v50 }
  0xdd   : > { %v3622_v57 = vpop.f32.mrf.mxu0 }
  0xde   : > { %v925_v63 = vmul.f32 %v3622_v57, %v4152_v47  ;;  %v965_v1 = vadd.f32 %v4160_v52, %v922_v54  ;;  %v1003_v15 = vmax.f32 %v967_v62, 0.0 }
  0xdf   : > { %v775_v4 = vpop.f32.mrf.mxu0 }
  0xe0   : > { %v968_v7 = vadd.f32 %v4160_v52, %v925_v63  ;;  %v923_v8 = vmul.f32 %v4152_v47, %v775_v4  ;;  %v1001_v19 = vmax.f32 %v965_v1, 0.0 }
  0xe1   : > { %v3625_v10 = vpop.f32.mrf.mxu0 }
  0xe2   : > { %v1004_v16 = vmax.f32 %v968_v7, 0.0  ;;  %v966_v17 = vadd.f32 %v4160_v52, %v923_v8  ;;  %v928_v18 = vmul.f32 %v3625_v10, %v4152_v47 }
  0xe3   : > { %v788_v20 = vpop.f32.mrf.mxu0 }
  0xe4   : > { %v1038_v25 = vpack.c.bf16 %v1004_v16, %v1003_v15  ;;  %v1002_v26 = vmax.f32 %v966_v17, 0.0  ;;  %v971_v27 = vadd.f32 %v4160_v52, %v928_v18  ;;  %v926_v28 = vmul.f32 %v4152_v47, %v788_v20 }
  0xe5   : > { %v3626_v29 = vpop.f32.mrf.mxu0 }
  0xe6   : > { %v1204_v33 = vsel %vm4163_vm3, %v1038_v25, 0  ;;  %v1037_v34 = vpack.c.bf16 %v1002_v26, %v1001_v19  ;;  %v969_v35 = vadd.f32 %v4160_v52, %v926_v28  ;;  %v929_v38 = vmul.f32 %v3626_v29, %v4152_v47 }
  0xe7   : > { %v1229_v37 = vshrl.u32 %v1204_v33, 16  ;;  %v791_v39 = vpop.f32.mrf.mxu0  ;;  %v1007_v45 = vmax.f32 %v971_v27, 0.0  ;;  %v1232_v51 = vshll.u32 %v1204_v33, 16  ;;  %v4256_v28 = vrot.slane %v3916_v23, %v1103_v6 }
  0xe8   : > { %v1203_v3 = vsel %vm4174_vm5, %v1037_v34, 0  ;;  %v927_v48 = vmul.f32 %v4152_v47, %v791_v39  ;;  %v972_v54 = vadd.f32 %v4160_v52, %v929_v38  ;;  %v1005_v57 = vmax.f32 %v969_v35, 0.0 }
  0xe9   : > { %v1231_v50 = vrot.slane %v1229_v37, 7  ;;  %v1222_v53 = vshrl.u32 %v1203_v3, 16  ;;  %v3629_v55 = vpop.f32.mrf.mxu0  ;;  %v1225_v56 = vshll.u32 %v1203_v3, 16  ;;  %vm1158_vm3 = vcmp.ne.s32.totalorder %v4200_v24, 0 }
  0xea   : > { %v970_v58 = vadd.f32 %v4160_v52, %v927_v48  ;;  %v932_v59 = vmul.f32 %v3629_v55, %v4152_v47  ;;  %v1008_v63 = vmax.f32 %v972_v54, 0.0  ;;  %vm1157_vm5 = vcmp.ne.s32.totalorder %v4206_v30, 0 }
  0xeb   : > { %v1234_v60 = vor.u32 %v1232_v51, %v1231_v50  ;;  %v1405_v61 = vsel %vm4225_vm12, %v1231_v50, 0  ;;  %v1224_v62 = vrot.slane %v1222_v53, 7  ;;  %v804_v44 = vpop.f32.mrf.mxu0 }
  0xec   : > { %v3361_v0 = vcombine.low %v1405_v61, %v1405_v61  ;;  %v1006_v1 = vmax.f32 %v970_v58, 0.0  ;;  %v975_v4 = vadd.f32 %v4160_v52, %v932_v59  ;;  %v930_v5 = vmul.f32 %v4152_v47, %v804_v44 }
  0xed   : > { %v1387_v7 = vsel %vm4225_vm12, 0, %v1234_v60  ;;  %v1227_v8 = vor.u32 %v1225_v56, %v1224_v62  ;;  %v1404_v10 = vsel %vm4225_vm12, %v1224_v62, 0  ;;  %v1040_v14 = vpack.c.bf16 %v1008_v63, %v1007_v45  ;;  %v3630_v15 = vpop.f32.mrf.mxu0 }
  0xee   : > { %v3359_v16 = vcombine.low %v1387_v7, %v1387_v7  ;;  %v3360_v17 = vcombine.high %v1387_v7, %v1387_v7  ;;  %1627 = vst.msk [vmem:[#allocation2 + $0x14] sm:$0x1] %vm1623_vm7, %v3361_v0  ;;  %v3358_v18 = vcombine.low %v1404_v10, %v1404_v10  ;;  %v1039_v19 = vpack.c.bf16 %v1006_v1, %v1005_v57 }
  0xef   : > { %v1386_v20 = vsel %vm4225_vm12, 0, %v1227_v8  ;;  %v1206_v25 = vsel %vm1152_vm8, %v1040_v14, 0  ;;  %v973_v26 = vadd.f32 %v4160_v52, %v930_v5  ;;  %v807_v27 = vpop.f32.mrf.mxu0  ;;  %v1011_v37 = vmax.f32 %v975_v4, 0.0 }
  0xf0   : > { %1625 = vst.msk [vmem:[#allocation2 + $0xc] sm:$0xf] %vm1620_vm9, %v3359_v16  ;;  %1626 = vst.msk [vmem:[#allocation2 + $0x10] sm:$0xf] %vm1620_vm9, %v3360_v17  ;;  %v3356_v29 = vcombine.low %v1386_v20, %v1386_v20  ;;  %v3357_v33 = vcombine.high %v1386_v20, %v1386_v20  ;;  %v1243_v34 = vshrl.u32 %v1206_v25, 16  ;;  %v1205_v35 = vsel %vm1151_vm11, %v1039_v19, 0 }
  0xf1   : > { %1624 = vst.msk [vmem:[#allocation2 + $0x8] sm:$0x1] %vm1623_vm7, %v3358_v18  ;;  %v933_v42 = vmul.f32 %v3630_v15, %v4152_v47  ;;  %v931_v6 = vmul.f32 %v4152_v47, %v807_v27  ;;  %v3633_v23 = vpop.f32.mrf.mxu0  ;;  %v1246_v39 = vshll.u32 %v1206_v25, 16  ;;  %v1236_v3 = vshrl.u32 %v1205_v35, 16 }
  0xf2   : > { %1621 = vst.msk [vmem:[#allocation2] sm:$0xf] %vm1620_vm9, %v3356_v29  ;;  %1622 = vst.msk [vmem:[#allocation2 + $0x4] sm:$0xf] %vm1620_vm9, %v3357_v33  ;;  %v1245_v38 = vrot.slane %v1243_v34, 7  ;;  %v936_v45 = vmul.f32 %v3633_v23, %v4152_v47  ;;  %v1239_v48 = vshll.u32 %v1205_v35, 16 }
  0xf3   : > { %v1009_v50 = vmax.f32 %v973_v26, 0.0  ;;  %v976_v11 = vadd.f32 %v4160_v52, %v933_v42  ;;  %v974_v51 = vadd.f32 %v4160_v52, %v931_v6  ;;  %v820_v53 = vpop.f32.mrf.mxu0  ;;  %v1238_v56 = vrot.slane %v1236_v3, 7 }
  0xf4   : > { %v1248_v54 = vor.u32 %v1246_v39, %v1245_v38  ;;  %v1407_v55 = vsel %vm4225_vm12, %v1245_v38, 0  ;;  %v979_v57 = vadd.f32 %v4160_v52, %v936_v45  ;;  %v934_v61 = vmul.f32 %v4152_v47, %v820_v53 }
  0xf5   : > { %v3367_v58 = vcombine.low %v1407_v55, %v1407_v55  ;;  %v1012_v59 = vmax.f32 %v976_v11, 0.0  ;;  %v1010_v60 = vmax.f32 %v974_v51, 0.0  ;;  %v3634_v62 = vpop.f32.mrf.mxu0  ;;  %v1241_v44 = vor.u32 %v1239_v48, %v1238_v56  ;;  %v4287_v18 = vld [vmem:[#allocation2 + $0x14] ss:$0 sps:$4 sm:$0x11]  }
  0xf6   : > { %v1389_v63 = vsel %vm4225_vm12, 0, %v1248_v54  ;;  %v1406_v0 = vsel %vm4225_vm12, %v1238_v56, 0  ;;  %v1015_v1 = vmax.f32 %v979_v57, 0.0  ;;  %v977_v16 = vadd.f32 %v4160_v52, %v934_v61 }
  0xf7   : > { %v3365_v4 = vcombine.low %v1389_v63, %v1389_v63  ;;  %v3366_v5 = vcombine.high %v1389_v63, %v1389_v63  ;;  %1633 = vst.msk [vmem:[#allocation2 + $0x2c] sm:$0x1] %vm1623_vm7, %v3367_v58  ;;  %v3364_v7 = vcombine.low %v1406_v0, %v1406_v0  ;;  %v1042_v8 = vpack.c.bf16 %v1012_v59, %v1011_v37  ;;  %v823_v10 = vpop.f32.mrf.mxu0  ;;  %v1679_v29 = vld [vmem:[#allocation2 + $0x10] sm:$0xf]  ;;  %v1731_v33 = vld [vmem:[#allocation2 + $0xc] sm:$0xe] }
  0xf8   : > { %v1388_v14 = vsel %vm4225_vm12, 0, %v1241_v44  ;;  %v1041_v15 = vpack.c.bf16 %v1010_v60, %v1009_v50  ;;  %v937_v17 = vmul.f32 %v3634_v62, %v4152_v47  ;;  %v935_v26 = vmul.f32 %v4152_v47, %v823_v10 }
  0xf9   : > { %1631 = vst.msk [vmem:[#allocation2 + $0x24] sm:$0xf] %vm1620_vm9, %v3365_v4  ;;  %1632 = vst.msk [vmem:[#allocation2 + $0x28] sm:$0xf] %vm1620_vm9, %v3366_v5  ;;  %v3362_v19 = vcombine.low %v1388_v14, %v1388_v14  ;;  %v3363_v20 = vcombine.high %v1388_v14, %v1388_v14  ;;  %v1208_v25 = vsel %vm1154_vm13, %v1042_v8, 0  ;;  %v3637_v27 = vpop.f32.mrf.mxu0  ;;  %v1013_v42 = vmax.f32 %v977_v16, 0.0 }
  0xfa   : > { %1630 = vst.msk [vmem:[#allocation2 + $0x20] sm:$0x1] %vm1623_vm7, %v3364_v7  ;;  %v1257_v34 = vshrl.u32 %v1208_v25, 16  ;;  %v1260_v35 = vshll.u32 %v1208_v25, 16  ;;  %v1207_v37 = vsel %vm1153_vm14, %v1041_v15, 0  ;;  %v980_v12 = vadd.f32 %v4160_v52, %v937_v17  ;;  %v3848_v16 = vld [vmem:[%s5180_s8 + $0x28] sm:$0xff]  }
  0xfb   : > { %1628 = vst.msk [vmem:[#allocation2 + $0x18] sm:$0xf] %vm1620_vm9, %v3362_v19  ;;  %1629 = vst.msk [vmem:[#allocation2 + $0x1c] sm:$0xf] %vm1620_vm9, %v3363_v20  ;;  %v1250_v6 = vshrl.u32 %v1207_v37, 16  ;;  %v1253_v23 = vshll.u32 %v1207_v37, 16  ;;  %v978_v38 = vadd.f32 %v4160_v52, %v935_v26  ;;  %v836_v39 = vpop.f32.mrf.mxu0  ;;  %v940_v45 = vmul.f32 %v3637_v27, %v4152_v47  ;;  %3655 = vmatprep.subr.bf16.mxu1 %v3848_v16 }
  0xfc   : > { %v1259_v3 = vrot.slane %v1257_v34, 7  ;;  %v938_v48 = vmul.f32 %v4152_v47, %v836_v39  ;;  %v3447_v13 = vcombine.low %v1731_v33, %v1679_v29  ;;  %v1016_v11 = vmax.f32 %v980_v12, 0.0  ;;  %v1678_v7 = vld [vmem:[#allocation2 + $0xc] sm:$0xf]  ;;  %3656 = vmatpush3.bf16.msra.mxu1 %v3848_v16 }
  0xfd   : > { %v1252_v50 = vrot.slane %v1250_v6, 7  ;;  %v1014_v51 = vmax.f32 %v978_v38, 0.0  ;;  %v2204_v53 = vrot.slane %v4287_v18, 1  ;;  %v3638_v54 = vpop.f32.mrf.mxu0  ;;  %v4307_v57 = vadd.f32 %v4160_v52, %v940_v45 }
  0xfe   : > { %v1262_v55 = vor.u32 %v1260_v35, %v1259_v3  ;;  %v1409_v56 = vsel %vm4225_vm12, %v1259_v3, 0  ;;  %v4310_v58 = vadd.f32 %v4160_v52, %v938_v48  ;;  %v1044_v62 = vpack.c.bf16 %v1016_v11, %v1015_v1  ;;  %v3849_v35 = vld [vmem:[%s5180_s8 + $0x20] sm:$0xff]   ;;  %v3851_v11 = vld [vmem:[%s5180_s8 + $0x18] sm:$0xff]  }
  0xff   : > { %v3373_v59 = vcombine.low %v1409_v56, %v1409_v56  ;;  %v1255_v60 = vor.u32 %v1253_v23, %v1252_v50  ;;  %v1408_v61 = vsel %vm4225_vm12, %v1252_v50, 0  ;;  %v839_v63 = vpop.f32.mrf.mxu0  ;;  %v1043_v4 = vpack.c.bf16 %v1014_v51, %v1013_v42  ;;  %3657 = vmatprep.subr.bf16.mxu1 %v3849_v35 }
 0x100   : > { %v1391_v44 = vsel %vm4225_vm12, 0, %v1262_v55  ;;  %v3370_v0 = vcombine.low %v1408_v61, %v1408_v61  ;;  %v1019_v5 = vmax.f32 %v4307_v57, 0.0  ;;  %v1210_v15 = vsel %vm1156_vm15, %v1044_v62, 0  ;;  %3658 = vmatpush3.bf16.msra.mxu1 %v3849_v35 }
 0x101   : > { %v3371_v8 = vcombine.low %v1391_v44, %v1391_v44  ;;  %v3372_v10 = vcombine.high %v1391_v44, %v1391_v44  ;;  %1639 = vst.msk [vmem:[#allocation2 + $0x44] sm:$0x1] %vm1623_vm7, %v3373_v59  ;;  %v1390_v14 = vsel %vm4225_vm12, 0, %v1255_v60  ;;  %v4323_v1 = vpop.f32.mrf.mxu0  ;;  %v1271_v20 = vshrl.u32 %v1210_v15, 16  ;;  %3659 = vmatprep.subr.bf16.mxu1 %v3851_v11 }
 0x102   : > { %v3368_v17 = vcombine.low %v1390_v14, %v1390_v14  ;;  %v3369_v19 = vcombine.high %v1390_v14, %v1390_v14  ;;  %1636 = vst.msk [vmem:[#allocation2 + $0x38] sm:$0x1] %vm1623_vm7, %v3370_v0  ;;  %v1274_v25 = vshll.u32 %v1210_v15, 16  ;;  %v1209_v21 = vsel %vm1155_vm0, %v1043_v4, 0 }
 0x103   : > { %1637 = vst.msk [vmem:[#allocation2 + $0x3c] sm:$0xf] %vm1620_vm9, %v3371_v8  ;;  %1638 = vst.msk [vmem:[#allocation2 + $0x40] sm:$0xf] %vm1620_vm9, %v3372_v10  ;;  %v1017_v26 = vmax.f32 %v4310_v58, 0.0  ;;  %v2203_v27 = vrot.slane %v3447_v13, 1  ;;  %v4335_v33 = vcombine.low %v1678_v7, %v1679_v29  ;;  %v852_v34 = vpop.f32.mrf.mxu0  ;;  %v941_v22 = vmul.f32 %v3638_v54, %v4152_v47 }
 0x104   : > { %1634 = vst.msk [vmem:[#allocation2 + $0x30] sm:$0xf] %vm1620_vm9, %v3368_v17  ;;  %1635 = vst.msk [vmem:[#allocation2 + $0x34] sm:$0xf] %vm1620_vm9, %v3369_v19  ;;  %v1273_v37 = vrot.slane %v1271_v20, 7  ;;  %v1264_v42 = vshrl.u32 %v1209_v21, 16  ;;  %v939_v12 = vmul.f32 %v4152_v47, %v839_v63  ;;  %v944_v17 = vmul.f32 %v4323_v1, %v4152_v47  ;;  %3660 = vmatpush3.bf16.msra.mxu1 %v3851_v11 }
 0x105   : > { %v1267_v6 = vshll.u32 %v1209_v21, 16  ;;  %v3850_v29 = vld [vmem:[%s5180_s8 + $0x10] sm:$0xff]   ;;  %v2205_v23 = vsel %vm2199_vm2, %v2203_v27, %v2204_v53  ;;  %v1906_v38 = vshrl.u32 %v4335_v33, 16  ;;  %v1908_v39 = vshll.u32 %v4335_v33, 16  ;;  %v3642_v3 = vpop.f32.mrf.mxu0  ;;  %v1681_v21 = vld [vmem:[#allocation2 + $0x1c] sm:$0xf] }
 0x106   : > { %v1276_v45 = vor.u32 %v1274_v25, %v1273_v37  ;;  %v1411_v48 = vsel %vm4225_vm12, %v1273_v37, 0  ;;  %v1266_v13 = vrot.slane %v1264_v42, 7  ;;  %2256 = vrot.lane.b32.xlu1 %v2205_v23, %s3917_s24  ;;  %v984_v50 = vadd.f32 %v4160_v52, %v941_v22  ;;  %3693 = vmatprep.subr.bf16.mxu0 %v3850_v29  ;;  %v4376_v19 = vld [vmem:[#allocation2 + $0x20] ss:$0 sps:$4 sm:$0x11]  }
 0x107   : > { %v3379_v51 = vcombine.low %v1411_v48, %v1411_v48  ;;  %v982_v53 = vadd.f32 %v4160_v52, %v939_v12  ;;  %v1910_v54 = vrot.slane %v1908_v39, 1  ;;  %v1913_v55 = vshll.u32 %v4287_v18, 16  ;;  %v855_v56 = vpop.f32.mrf.mxu0  ;;  %3694 = vmatpush3.bf16.msra.mxu0 %v3850_v29  ;;  %v1732_v27 = vld [vmem:[#allocation2 + $0x18] sm:$0xe] }
 0x108   : > { %v1393_v58 = vsel %vm4225_vm12, 0, %v1276_v45  ;;  %v1269_v59 = vor.u32 %v1267_v6, %v1266_v13  ;;  %v1410_v60 = vsel %vm4225_vm12, %v1266_v13, 0  ;;  %v1020_v61 = vmax.f32 %v984_v50, 0.0 }
 0x109   : > { %v3377_v62 = vcombine.low %v1393_v58, %v1393_v58  ;;  %v3378_v63 = vcombine.high %v1393_v58, %v1393_v58  ;;  %1645 = vst.msk [vmem:[#allocation2 + $0x5c] sm:$0x1] %vm1623_vm7, %v3379_v51  ;;  %v3376_v44 = vcombine.low %v1410_v60, %v1410_v60  ;;  %v1018_v0 = vmax.f32 %v982_v53, 0.0  ;;  %v4365_v18 = vpop.f32.mrf.mxu0 }
 0x10a   : > { %v1392_v4 = vsel %vm4225_vm12, 0, %v1269_v59  ;;  %v1046_v7 = vpack.c.bf16 %v1020_v61, %v1019_v5  ;;  %v1911_v8 = vor.u32 %v1910_v54, %v1906_v38  ;;  %v1915_v10 = vrot.slane %v1913_v55, 1 }
 0x10b   : > { %1643 = vst.msk [vmem:[#allocation2 + $0x54] sm:$0xf] %vm1620_vm9, %v3377_v62  ;;  %1644 = vst.msk [vmem:[#allocation2 + $0x58] sm:$0xf] %vm1620_vm9, %v3378_v63  ;;  %v3374_v14 = vcombine.low %v1392_v4, %v1392_v4  ;;  %v3375_v15 = vcombine.high %v1392_v4, %v1392_v4  ;;  %v1045_v16 = vpack.c.bf16 %v1018_v0, %v1017_v26  ;;  %v868_v35 = vpop.f32.mrf.mxu0  ;;  %vm1159_vm8 = vcmp.ne.s32.totalorder %v4210_v32, 0 }
 0x10c   : > { %1642 = vst.msk [vmem:[#allocation2 + $0x50] sm:$0x1] %vm1623_vm7, %v3376_v44  ;;  %v1212_v57 = vsel %vm1158_vm3, %v1046_v7, 0  ;;  %v1916_v5 = vsel %vm1892_vm4, %v1911_v8, %v1915_v10  ;;  %v942_v20 = vmul.f32 %v4152_v47, %v852_v34  ;;  %v945_v25 = vmul.f32 %v3642_v3, %v4152_v47  ;;  %v1680_v34 = vld [vmem:[#allocation2 + $0x18] sm:$0xf] }
 0x10d   : > { %1640 = vst.msk [vmem:[#allocation2 + $0x48] sm:$0xf] %vm1620_vm9, %v3374_v14  ;;  %1641 = vst.msk [vmem:[#allocation2 + $0x4c] sm:$0xf] %vm1620_vm9, %v3375_v15  ;;  %v1285_v1 = vshrl.u32 %v1212_v57, 16  ;;  %v1211_v26 = vsel %vm1157_vm5, %v1045_v16, 0  ;;  %2111 = vrot.lane.b32.xlu0 %v1916_v5, %s3918_s27  ;;  %v987_v24 = vadd.f32 %v4160_v52, %v944_v17  ;;  %v1144_v37 = vrot.slane %v4233_v49, %v4147_v46  ;;  %v3646_v13 = vpop.f32.mrf.mxu0 }
 0x10e   : > { %v1288_v42 = vshll.u32 %v1212_v57, 16  ;;  %v1278_v6 = vshrl.u32 %v1211_v26, 16  ;;  %v1281_v22 = vshll.u32 %v1211_v26, 16  ;;  %v988_v29 = vadd.f32 %v4160_v52, %v945_v25  ;;  %v1682_v16 = vld [vmem:[#allocation2 + $0x24] sm:$0xf] }
 0x10f   : > { %v1287_v23 = vrot.slane %v1285_v1, 7  ;;  %v1023_v12 = vmax.f32 %v987_v24, 0.0  ;;  %v985_v38 = vadd.f32 %v4160_v52, %v942_v20  ;;  %v3448_v30 = vcombine.low %v1732_v27, %v1681_v21  ;;  %v871_v7 = vpop.f32.mrf.mxu0  ;;  %v1683_v20 = vld [vmem:[#allocation2 + $0x28] sm:$0xf] }
 0x110   : > { %v1280_v39 = vrot.slane %v1278_v6, 7  ;;  %v1024_v3 = vmax.f32 %v988_v29, 0.0  ;;  %v2207_v45 = vrot.slane %v4376_v19, 1  ;;  %v4395_v48 = vcombine.low %v1680_v34, %v1681_v21 }
 0x111   : > { %v1290_v50 = vor.u32 %v1288_v42, %v1287_v23  ;;  %v1413_v11 = vsel %vm4225_vm12, %v1287_v23, 0  ;;  %v2206_v51 = vrot.slane %v3448_v30, 1  ;;  %v943_v53 = vmul.f32 %v4152_v47, %v855_v56  ;;  %v3649_v6 = vpop.f32.mrf.mxu0  ;;  %v4436_v23 = vld [vmem:[#allocation2 + $0x2c] ss:$0 sps:$4 sm:$0x11]  }
 0x112   : > { %v3385_v54 = vcombine.low %v1413_v11, %v1413_v11  ;;  %v1283_v55 = vor.u32 %v1281_v22, %v1280_v39  ;;  %v1412_v58 = vsel %vm4225_vm12, %v1280_v39, 0  ;;  %v1048_v59 = vpack.c.bf16 %v1024_v3, %v1023_v12  ;;  %v1733_v3 = vld [vmem:[#allocation2 + $0x24] sm:$0xe] }
 0x113   : > { %v1395_v60 = vsel %vm4225_vm12, 0, %v1290_v50  ;;  %v3382_v61 = vcombine.low %v1412_v58, %v1412_v58  ;;  %v2208_v62 = vsel %vm2199_vm2, %v2206_v51, %v2207_v45  ;;  %v986_v63 = vadd.f32 %v4160_v52, %v943_v53 }
 0x114   : > { %v3383_v44 = vcombine.low %v1395_v60, %v1395_v60  ;;  %v3384_v0 = vcombine.high %v1395_v60, %v1395_v60  ;;  %1651 = vst.msk [vmem:[#allocation2 + $0x74] sm:$0x1] %vm1623_vm7, %v3385_v54  ;;  %v1394_v56 = vsel %vm4225_vm12, 0, %v1283_v55  ;;  %v1214_v4 = vsel %vm1160_vm6, %v1048_v59, 0  ;;  %2258 = vrot.lane.b32.xlu1 %v2208_v62, %s3917_s24  ;;  %v884_v55 = vpop.f32.mrf.mxu0 }
 0x115   : > { %v3380_v8 = vcombine.low %v1394_v56, %v1394_v56  ;;  %v3381_v10 = vcombine.high %v1394_v56, %v1394_v56  ;;  %1648 = vst.msk [vmem:[#allocation2 + $0x68] sm:$0x1] %vm1623_vm7, %v3382_v61  ;;  %v1021_v14 = vmax.f32 %v985_v38, 0.0  ;;  %v1299_v15 = vshrl.u32 %v1214_v4, 16 }
 0x116   : > { %1649 = vst.msk [vmem:[#allocation2 + $0x6c] sm:$0xf] %vm1620_vm9, %v3383_v44  ;;  %1650 = vst.msk [vmem:[#allocation2 + $0x70] sm:$0xf] %vm1620_vm9, %v3384_v0  ;;  %v1302_v17 = vshll.u32 %v1214_v4, 16  ;;  %v1022_v57 = vmax.f32 %v986_v63, 0.0  ;;  %v948_v31 = vmul.f32 %v4365_v18, %v4152_v47  ;;  %v946_v1 = vmul.f32 %v4152_v47, %v868_v35 }
 0x117   : > { %v1920_v5 = vshll.u32 %v4395_v48, 16  ;;  %1646 = vst.msk [vmem:[#allocation2 + $0x60] sm:$0xf] %vm1620_vm9, %v3380_v8  ;;  %1647 = vst.msk [vmem:[#allocation2 + $0x64] sm:$0xf] %vm1620_vm9, %v3381_v10  ;;  %v1301_v25 = vrot.slane %v1299_v15, 7  ;;  %v949_v42 = vmul.f32 %v3646_v13, %v4152_v47  ;;  %v4434_v29 = vcombine.low %v1682_v16, %v1683_v20 }
 0x118   : > { %v1918_v21 = vshrl.u32 %v4395_v48, 16  ;;  %v1925_v27 = vshll.u32 %v4376_v19, 16  ;;  %v4427_v18 = vld [vmem:[%s5180_s8 + $0x40] sm:$0xff]   ;;  %v1047_v26 = vpack.c.bf16 %v1022_v57, %v1021_v14  ;;  %v991_v24 = vadd.f32 %v4160_v52, %v948_v31  ;;  %v1684_v57 = vld [vmem:[#allocation2 + $0x30] sm:$0xf] }
 0x119   : > { %v1922_v34 = vrot.slane %v1920_v5, 1  ;;  %v1304_v22 = vor.u32 %v1302_v17, %v1301_v25  ;;  %v1415_v19 = vsel %vm4225_vm12, %v1301_v25, 0  ;;  %v989_v35 = vadd.f32 %v4160_v52, %v946_v1  ;;  %3731 = vmatprep.subr.bf16.mxu1 %v4427_v18  ;;  %v4461_v31 = vld [vmem:[#allocation2 + $0x38] ss:$0 sps:$4 sm:$0x11]  }
 0x11a   : > { %v3391_v12 = vcombine.low %v1415_v19, %v1415_v19  ;;  %v1213_v38 = vsel %vm1159_vm8, %v1047_v26, 0  ;;  %v1927_v39 = vrot.slane %v1925_v27, 1  ;;  %v1027_v11 = vmax.f32 %v991_v24, 0.0  ;;  %v4465_v27 = vld [vmem:[#allocation2 + $0x34] sm:$0xf] }
 0x11b   : > { %v1923_v30 = vor.u32 %v1922_v34, %v1918_v21  ;;  %v1397_v45 = vsel %vm4225_vm12, 0, %v1304_v22  ;;  %v1292_v13 = vshrl.u32 %v1213_v38, 16  ;;  %v1295_v50 = vshll.u32 %v1213_v38, 16 }
 0x11c   : > { %vm1161_vm11 = vcmp.ne.s32.totalorder %v4219_v40, 0  ;;  %v3389_v51 = vcombine.low %v1397_v45, %v1397_v45  ;;  %v3390_v53 = vcombine.high %v1397_v45, %v1397_v45  ;;  %1657 = vst.msk [vmem:[#allocation2 + $0x8c] sm:$0x1] %vm1623_vm7, %v3391_v12  ;;  %v992_v32 = vadd.f32 %v4160_v52, %v949_v42  ;;  %v1686_v42 = vld [vmem:[#allocation2 + $0x3c] sm:$0xf] }
 0x11d   : > { %v1928_v54 = vsel %vm1892_vm4, %v1923_v30, %v1927_v39  ;;  %v1294_v58 = vrot.slane %v1292_v13, 7  ;;  %v1025_v59 = vmax.f32 %v989_v35, 0.0  ;;  %v1932_v60 = vshll.u32 %v4434_v29, 16 }
 0x11e   : > { %2113 = vrot.lane.b32.xlu0 %v1928_v54, %s3918_s27  ;;  %v1937_v61 = vshll.u32 %v4436_v23, 16  ;;  %1655 = vst.msk [vmem:[#allocation2 + $0x84] sm:$0xf] %vm1620_vm9, %v3389_v51  ;;  %1656 = vst.msk [vmem:[#allocation2 + $0x88] sm:$0xf] %vm1620_vm9, %v3390_v53  ;;  %v1028_v62 = vmax.f32 %v992_v32, 0.0  ;;  %v947_v63 = vmul.f32 %v4152_v47, %v871_v7  ;;  %v952_v44 = vmul.f32 %v3649_v6, %v4152_v47  ;;  %v3650_v7 = vpop.f32.mrf.mxu0 }
 0x11f   : > { %v3449_v0 = vcombine.low %v1733_v3, %v1683_v20  ;;  %v1297_v56 = vor.u32 %v1295_v50, %v1294_v58  ;;  %v1414_v4 = vsel %vm4225_vm12, %v1294_v58, 0  ;;  %v1930_v8 = vshrl.u32 %v4434_v29, 16  ;;  %v4470_v6 = vld [vmem:[#allocation2 + $0x40] sm:$0xf] }
 0x120   : > { %v1934_v10 = vrot.slane %v1932_v60, 1  ;;  %v3388_v14 = vcombine.low %v1414_v4, %v1414_v4  ;;  %v1050_v15 = vpack.c.bf16 %v1028_v62, %v1027_v11  ;;  %v990_v16 = vadd.f32 %v4160_v52, %v947_v63  ;;  %v887_v3 = vpop.f32.mrf.mxu0  ;;  %v1734_v60 = vld [vmem:[#allocation2 + $0x30] sm:$0xe] }
 0x121   : > { %v4459_v17 = vadd.f32 %v4160_v52, %v952_v44  ;;  %v1396_v5 = vsel %vm4225_vm12, 0, %v1297_v56  ;;  %v1939_v25 = vrot.slane %v1937_v61, 1  ;;  %v2209_v21 = vrot.slane %v3449_v0, 1  ;;  %v4497_v44 = vld [vmem:[#allocation2 + $0x44] ss:$0 sps:$4 sm:$0x11]  }
 0x122   : > { %v1935_v20 = vor.u32 %v1934_v10, %v1930_v8  ;;  %v3386_v1 = vcombine.low %v1396_v5, %v1396_v5  ;;  %v3387_v26 = vcombine.high %v1396_v5, %v1396_v5  ;;  %1654 = vst.msk [vmem:[#allocation2 + $0x80] sm:$0x1] %vm1623_vm7, %v3388_v14  ;;  %v1216_v24 = vsel %vm1162_vm10, %v1050_v15, 0  ;;  %v3653_v0 = vpop.f32.mrf.mxu0 }
 0x123   : > { %v1026_v34 = vmax.f32 %v990_v16, 0.0  ;;  %v1313_v22 = vshrl.u32 %v1216_v24, 16  ;;  %v1316_v19 = vshll.u32 %v1216_v24, 16  ;;  %v2210_v12 = vrot.slane %v4436_v23, 1  ;;  %v1735_v24 = vld [vmem:[#allocation2 + $0x3c] sm:$0xe] }
 0x124   : > { %v1940_v35 = vsel %vm1892_vm4, %v1935_v20, %v1939_v25  ;;  %1652 = vst.msk [vmem:[#allocation2 + $0x78] sm:$0xf] %vm1620_vm9, %v3386_v1  ;;  %1653 = vst.msk [vmem:[#allocation2 + $0x7c] sm:$0xf] %vm1620_vm9, %v3387_v26  ;;  %v1031_v36 = vmax.f32 %v4459_v17, 0.0  ;;  %v4479_v30 = vcombine.low %v1684_v57, %v4465_v27  ;;  %v1949_v39 = vshll.u32 %v4461_v31, 16 }
 0x125   : > { %2115 = vrot.lane.b32.xlu0 %v1940_v35, %s3918_s27  ;;  %v1049_v38 = vpack.c.bf16 %v1026_v34, %v1025_v59  ;;  %vm1164_vm13 = vcmp.ne.s32.totalorder %v4221_v2, 0  ;;  %v1315_v45 = vrot.slane %v1313_v22, 7  ;;  %v950_v23 = vmul.f32 %v4152_v47, %v884_v55  ;;  %v900_v34 = vpop.f32.mrf.mxu0 }
 0x126   : > { %v953_v13 = vmul.f32 %v3650_v7, %v4152_v47  ;;  %v4486_v50 = vcombine.low %v1686_v42, %v4470_v6  ;;  %v2211_v51 = vsel %vm2199_vm2, %v2209_v21, %v2210_v12  ;;  %v1942_v53 = vshrl.u32 %v4479_v30, 16 }
 0x127   : > { %v1215_v11 = vsel %vm1161_vm11, %v1049_v38, 0  ;;  %v1944_v54 = vshll.u32 %v4479_v30, 16  ;;  %v1318_v32 = vor.u32 %v1316_v19, %v1315_v45  ;;  %v1417_v58 = vsel %vm4225_vm12, %v1315_v45, 0 }
 0x128   : > { %v1306_v59 = vshrl.u32 %v1215_v11, 16  ;;  %v1951_v55 = vrot.slane %v1949_v39, 1  ;;  %v3397_v61 = vcombine.low %v1417_v58, %v1417_v58  ;;  %v1309_v62 = vshll.u32 %v1215_v11, 16 }
 0x129   : > { %2260 = vrot.lane.b32.xlu0 %v2211_v51, %s3917_s24  ;;  %v1946_v63 = vrot.slane %v1944_v54, 1  ;;  %v996_v40 = vadd.f32 %v4160_v52, %v953_v13  ;;  %v1399_v56 = vsel %vm4225_vm12, 0, %v1318_v32  ;;  %v4502_v8 = vadd.f32 %v4160_v52, %v950_v23  ;;  %v3853_v23 = vld [vmem:[%s5180_s8 + $0x8] sm:$0xff]  }
 0x12a   : > { %v1308_v4 = vrot.slane %v1306_v59, 7  ;;  %v1956_v10 = vshll.u32 %v4486_v50, 16  ;;  %v3395_v14 = vcombine.low %v1399_v56, %v1399_v56  ;;  %v3396_v15 = vcombine.high %v1399_v56, %v1399_v56  ;;  %1663 = vst.msk [vmem:[#allocation2 + $0xa4] sm:$0x1] %vm1623_vm7, %v3397_v61  ;;  %v1688_v51 = vld [vmem:[#allocation2 + $0x48] sm:$0xf]  ;;  %v3654_v59 = vpop.f32.mrf.mxu0  ;;  %3695 = vmatprep.subr.bf16.mxu0 %v3853_v23 }
 0x12b   : > { %v1947_v16 = vor.u32 %v1946_v63, %v1942_v53  ;;  %v1954_v17 = vshrl.u32 %v4486_v50, 16  ;;  %v1032_v5 = vmax.f32 %v996_v40, 0.0  ;;  %v1961_v1 = vshll.u32 %v4497_v44, 16  ;;  %v4530_v53 = vld [vmem:[#allocation2 + $0x4c] sm:$0xf]  ;;  %3696 = vmatpush3.bf16.msra.mxu0 %v3853_v23 }
 0x12c   : > { %v1311_v57 = vor.u32 %v1309_v62, %v1308_v4  ;;  %v1416_v7 = vsel %vm4225_vm12, %v1308_v4, 0  ;;  %v1958_v20 = vrot.slane %v1956_v10, 1  ;;  %1661 = vst.msk [vmem:[#allocation2 + $0x9c] sm:$0xf] %vm1620_vm9, %v3395_v14  ;;  %1662 = vst.msk [vmem:[#allocation2 + $0xa0] sm:$0xf] %vm1620_vm9, %v3396_v15  ;;  %v3450_v26 = vcombine.low %v1734_v60, %v4465_v27 }
 0x12d   : > { %v3394_v25 = vcombine.low %v1416_v7, %v1416_v7  ;;  %v1952_v21 = vsel %vm1892_vm4, %v1947_v16, %v1951_v55  ;;  %vm1163_vm14 = vcmp.ne.s32.totalorder %v4256_v28, 0  ;;  %v1052_v22 = vpack.c.bf16 %v1032_v5, %v1031_v36  ;;  %v4520_v27 = vld [vmem:[#allocation2 + $0x50] ss:$0 sps:$4 sm:$0x11]   ;;  %v1690_v4 = vld [vmem:[#allocation2 + $0x54] sm:$0xf] }
 0x12e   : > { %v1398_v42 = vsel %vm4225_vm12, 0, %v1311_v57  ;;  %2117 = vrot.lane.b32.xlu1 %v1952_v21, %s3918_s27  ;;  %v1959_v19 = vor.u32 %v1958_v20, %v1954_v17  ;;  %v2213_v35 = vrot.slane %v4461_v31, 1  ;;  %v1963_v39 = vrot.slane %v1961_v1, 1  ;;  %v4560_v16 = vld [vmem:[#allocation2 + $0x5c] ss:$0 sps:$4 sm:$0x11]  }
 0x12f   : > { %v3392_v12 = vcombine.low %v1398_v42, %v1398_v42  ;;  %v3393_v38 = vcombine.high %v1398_v42, %v1398_v42  ;;  %1660 = vst.msk [vmem:[#allocation2 + $0x98] sm:$0x1] %vm1623_vm7, %v3394_v25  ;;  %v2212_v45 = vrot.slane %v3450_v26, 1  ;;  %v1218_v13 = vsel %vm1164_vm13, %v1052_v22, 0  ;;  %v3858_v21 = vld [vmem:[%s5179_s7] ss:$0 sm:$0xff] }
 0x130   : > { %v951_v36 = vmul.f32 %v4152_v47, %v887_v3  ;;  %v956_v11 = vmul.f32 %v3653_v0, %v4152_v47  ;;  %v3451_v31 = vcombine.low %v1735_v24, %v4470_v6  ;;  %v1029_v54 = vmax.f32 %v4502_v8, 0.0  ;;  %v1691_v8 = vld [vmem:[#allocation2 + $0x58] sm:$0xf]  ;;  %v1736_v24 = vld [vmem:[#allocation2 + $0x48] sm:$0xe] }
 0x131   : > { %1658 = vst.msk [vmem:[#allocation2 + $0x90] sm:$0xf] %vm1620_vm9, %v3392_v12  ;;  %1659 = vst.msk [vmem:[#allocation2 + $0x94] sm:$0xf] %vm1620_vm9, %v3393_v38  ;;  %v1327_v32 = vshrl.u32 %v1218_v13, 16  ;;  %v1964_v58 = vsel %vm1892_vm4, %v1959_v19, %v1963_v39  ;;  %v2214_v2 = vsel %vm2199_vm2, %v2212_v45, %v2213_v35  ;;  %v1330_v3 = vshll.u32 %v1218_v13, 16  ;;  %v903_v45 = vpop.f32.mrf.mxu0 }
 0x132   : > { %2119 = vrot.lane.b32.xlu0 %v1964_v58, %s3918_s27  ;;  %2262 = vrot.lane.b32.xlu1 %v2214_v2, %s3917_s24  ;;  %v994_v47 = vadd.f32 %v4160_v52, %v951_v36  ;;  %v999_v6 = vadd.f32 %v4160_v52, %v956_v11  ;;  %v2215_v55 = vrot.slane %v3451_v31, 1  ;;  %vm4544_vm15 = vcmp.ne.s32.totalorder %v1148_v9, 0  ;;  %v3857_v52 = vld [vmem:[%s5178_s6] ss:$0 sm:$0xff]  ;;  %v1737_v31 = vld [vmem:[#allocation2 + $0x54] sm:$0xe] }
 0x133   : > { %v1329_v61 = vrot.slane %v1327_v32, 7  ;;  %v2216_v62 = vrot.slane %v4497_v44, 1  ;;  %v4550_v63 = vcombine.low %v1688_v51, %v4530_v53  ;;  %v1973_v40 = vshll.u32 %v4520_v27, 16 }
 0x134   : > { %v1030_v0 = vmax.f32 %v994_v47, 0.0  ;;  %v1035_v56 = vmax.f32 %v999_v6, 0.0  ;;  %v954_v43 = vmul.f32 %v3857_v52, %v900_v34  ;;  %v957_v9 = vmul.f32 %v3857_v52, %v3654_v59  ;;  %v4590_v47 = vld [vmem:[#allocation2 + $0x68] ss:$0 sps:$4 sm:$0x11]  }
 0x135   : > { %v1332_v10 = vor.u32 %v1330_v3, %v1329_v61  ;;  %v1419_v44 = vsel %vm4225_vm12, %v1329_v61, 0  ;;  %v2217_v14 = vsel %vm2199_vm2, %v2215_v55, %v2216_v62  ;;  %v1968_v15 = vshll.u32 %v4550_v63, 16  ;;  %v1694_v55 = vld [vmem:[#allocation2 + $0x6c] sm:$0xf] }
 0x136   : > { %v3403_v17 = vcombine.low %v1419_v44, %v1419_v44  ;;  %v1051_v57 = vpack.c.bf16 %v1030_v0, %v1029_v54  ;;  %2264 = vrot.lane.b32.xlu0 %v2217_v14, %s3917_s24  ;;  %v1966_v7 = vshrl.u32 %v4550_v63, 16  ;;  %v1975_v5 = vrot.slane %v1973_v40, 1  ;;  %v1692_v0 = vld [vmem:[#allocation2 + $0x60] sm:$0xf] }
 0x137   : > { %v1401_v20 = vsel %vm4225_vm12, 0, %v1332_v10  ;;  %v1970_v25 = vrot.slane %v1968_v15, 1  ;;  %v1000_v1 = vadd.f32 %v3858_v21, %v957_v9  ;;  %v4569_v26 = vcombine.low %v1690_v4, %v1691_v8  ;;  %v4601_v10 = vld [vmem:[#allocation2 + $0x70] sm:$0xf] }
 0x138   : > { %v3401_v34 = vcombine.low %v1401_v20, %v1401_v20  ;;  %v3402_v42 = vcombine.high %v1401_v20, %v1401_v20  ;;  %1669 = vst.msk [vmem:[#allocation2 + $0xbc] sm:$0x1] %vm1623_vm7, %v3403_v17  ;;  %v1217_v22 = vsel %vm1163_vm14, %v1051_v57, 0  ;;  %v997_v19 = vadd.f32 %v3858_v21, %v954_v43  ;;  %v4606_v15 = vld [vmem:[#allocation2 + $0x74] ss:$0 sps:$4 sm:$0x11]  }
 0x139   : > { %v1320_v35 = vshrl.u32 %v1217_v22, 16  ;;  %v1323_v12 = vshll.u32 %v1217_v22, 16  ;;  %v1971_v38 = vor.u32 %v1970_v25, %v1966_v7  ;;  %v1036_v39 = vmax.f32 %v1000_v1, 0.0 }
 0x13a   : > { %1667 = vst.msk [vmem:[#allocation2 + $0xb4] sm:$0xf] %vm1620_vm9, %v3401_v34  ;;  %1668 = vst.msk [vmem:[#allocation2 + $0xb8] sm:$0xf] %vm1620_vm9, %v3402_v42  ;;  %v1978_v23 = vshrl.u32 %v4569_v26, 16  ;;  %v1980_v13 = vshll.u32 %v4569_v26, 16  ;;  %v3452_v11 = vcombine.low %v1736_v24, %v4530_v53  ;;  %v955_v53 = vmul.f32 %v3857_v52, %v903_v45 }
 0x13b   : > { %v1985_v36 = vshll.u32 %v4560_v16, 16  ;;  %vm4583_vm0 = vcmp.ne.s32.totalorder %v1144_v37, 0  ;;  %v1322_v51 = vrot.slane %v1320_v35, 7  ;;  %v1976_v54 = vsel %vm1892_vm4, %v1971_v38, %v1975_v5  ;;  %v1738_v42 = vld [vmem:[#allocation2 + $0x60] sm:$0xe] }
 0x13c   : > { %v1054_v32 = vpack.c.bf16 %v1036_v39, %v1035_v56  ;;  %v2219_v58 = vrot.slane %v4520_v27, 1  ;;  %2121 = vrot.lane.b32.xlu1 %v1976_v54, %s3918_s27  ;;  %v1982_v2 = vrot.slane %v1980_v13, 1  ;;  %v2218_v3 = vrot.slane %v3452_v11, 1  ;;  %v4596_v56 = vld [vmem:[#allocation2 + $0x64] sm:$0xf] }
 0x13d   : > { %v1987_v59 = vrot.slane %v1985_v36, 1  ;;  %v1325_v46 = vor.u32 %v1323_v12, %v1322_v51  ;;  %v1418_v49 = vsel %vm4225_vm12, %v1322_v51, 0  ;;  %v3453_v6 = vcombine.low %v1737_v31, %v1691_v8  ;;  %v1739_v12 = vld [vmem:[#allocation2 + $0x6c] sm:$0xe]  ;;  %v1696_v13 = vld [vmem:[#allocation2 + $0x78] sm:$0xf] }
 0x13e   : > { %v1220_v37 = vsel %vm4544_vm15, %v1054_v32, 0  ;;  %v3400_v61 = vcombine.low %v1418_v49, %v1418_v49  ;;  %v1983_v40 = vor.u32 %v1982_v2, %v1978_v23  ;;  %v2220_v43 = vsel %vm2199_vm2, %v2218_v3, %v2219_v58  ;;  %v4631_v36 = vld [vmem:[#allocation2 + $0x7c] sm:$0xf]  ;;  %v4633_v11 = vld [vmem:[#allocation2 + $0x80] ss:$0 sps:$4 sm:$0x11]  }
 0x13f   : > { %v1341_v62 = vshrl.u32 %v1220_v37, 16  ;;  %v1344_v27 = vshll.u32 %v1220_v37, 16  ;;  %v1400_v52 = vsel %vm4225_vm12, 0, %v1325_v46  ;;  %v998_v9 = vadd.f32 %v3858_v21, %v955_v53  ;;  %v4644_v37 = vld [vmem:[#allocation2 + $0x8c] ss:$0 sps:$4 sm:$0x11]  }
 0x140   : > { %v2221_v4 = vrot.slane %v3453_v6, 1  ;;  %v3398_v60 = vcombine.low %v1400_v52, %v1400_v52  ;;  %v3399_v44 = vcombine.high %v1400_v52, %v1400_v52  ;;  %1666 = vst.msk [vmem:[#allocation2 + $0xb0] sm:$0x1] %vm1623_vm7, %v3400_v61  ;;  %v1988_v14 = vsel %vm1892_vm4, %v1983_v40, %v1987_v59  ;;  %2266 = vrot.lane.b32.xlu1 %v2220_v43, %s3917_s24  ;;  %v1740_v43 = vld [vmem:[#allocation2 + $0x78] sm:$0xe] }
 0x141   : > { %v1343_v8 = vrot.slane %v1341_v62, 7  ;;  %v1033_v17 = vmax.f32 %v997_v19, 0.0  ;;  %2123 = vrot.lane.b32.xlu0 %v1988_v14, %s3918_s27  ;;  %v1034_v57 = vmax.f32 %v998_v9, 0.0  ;;  %v2222_v7 = vrot.slane %v4560_v16, 1  ;;  %v1698_v62 = vld [vmem:[#allocation2 + $0x84] sm:$0xf] }
 0x142   : > { %v4611_v5 = vcombine.low %v1692_v0, %v4596_v56  ;;  %1664 = vst.msk [vmem:[#allocation2 + $0xa8] sm:$0xf] %vm1620_vm9, %v3398_v60  ;;  %1665 = vst.msk [vmem:[#allocation2 + $0xac] sm:$0xf] %vm1620_vm9, %v3399_v44  ;;  %v1997_v21 = vshll.u32 %v4590_v47, 16  ;;  %v4619_v1 = vcombine.low %v1694_v55, %v4601_v10  ;;  %v2009_v35 = vshll.u32 %v4606_v15, 16 }
 0x143   : > { %v1346_v20 = vor.u32 %v1344_v27, %v1343_v8  ;;  %v1421_v25 = vsel %vm4225_vm12, %v1343_v8, 0  ;;  %v1053_v34 = vpack.c.bf16 %v1034_v57, %v1033_v17  ;;  %v2223_v22 = vsel %vm2199_vm2, %v2221_v4, %v2222_v7  ;;  %v4647_v27 = vld [vmem:[#allocation2 + $0x88] sm:$0xf]  ;;  %v1702_v57 = vld [vmem:[#allocation2 + $0x9c] sm:$0xf] }
 0x144   : > { %v3409_v24 = vcombine.low %v1421_v25, %v1421_v25  ;;  %v1992_v19 = vshll.u32 %v4611_v5, 16  ;;  %v2004_v23 = vshll.u32 %v4619_v1, 16  ;;  %v1990_v51 = vshrl.u32 %v4611_v5, 16  ;;  %v4663_v7 = vld [vmem:[#allocation2 + $0xa0] sm:$0xf] }
 0x145   : > { %v1403_v16 = vsel %vm4225_vm12, 0, %v1346_v20  ;;  %v1219_v45 = vsel %vm4583_vm0, %v1053_v34, 0  ;;  %2268 = vrot.lane.b32.xlu0 %v2223_v22, %s3917_s24  ;;  %v1999_v32 = vrot.slane %v1997_v21, 1  ;;  %v2002_v28 = vshrl.u32 %v4619_v1, 16  ;;  %v4668_v34 = vld [vmem:[#allocation2 + $0x94] sm:$0xf] }
 0x146   : > { %v3407_v38 = vcombine.low %v1403_v16, %v1403_v16  ;;  %v3408_v39 = vcombine.high %v1403_v16, %v1403_v16  ;;  %1675 = vst.msk [vmem:[#allocation2 + $0xd4] sm:$0x1] %vm1623_vm7, %v3409_v24  ;;  %v1334_v31 = vshrl.u32 %v1219_v45, 16  ;;  %v1994_v54 = vrot.slane %v1992_v19, 1  ;;  %v1700_v24 = vld [vmem:[#allocation2 + $0x90] sm:$0xf] }
 0x147   : > { %v2006_v58 = vrot.slane %v2004_v23, 1  ;;  %v3454_v2 = vcombine.low %v1738_v42, %v4596_v56  ;;  %v3455_v59 = vcombine.low %v1739_v12, %v4601_v10  ;;  %v1337_v53 = vshll.u32 %v1219_v45, 16  ;;  %v4673_v19 = vld [vmem:[#allocation2 + $0x98] ss:$0 sps:$4 sm:$0x11]  }
 0x148   : > { %1673 = vst.msk [vmem:[#allocation2 + $0xcc] sm:$0xf] %vm1620_vm9, %v3407_v38  ;;  %1674 = vst.msk [vmem:[#allocation2 + $0xd0] sm:$0xf] %vm1620_vm9, %v3408_v39  ;;  %v1336_v3 = vrot.slane %v1334_v31, 7  ;;  %v1995_v46 = vor.u32 %v1994_v54, %v1990_v51  ;;  %v4642_v49 = vcombine.low %v1696_v13, %v4631_v36  ;;  %v2011_v55 = vrot.slane %v2009_v35, 1 }
 0x149   : > { %v2007_v6 = vor.u32 %v2006_v58, %v2002_v28  ;;  %v2225_v61 = vrot.slane %v4590_v47, 1  ;;  %v2224_v52 = vrot.slane %v3454_v2, 1  ;;  %v2227_v10 = vrot.slane %v3455_v59, 1  ;;  %v1741_v47 = vld [vmem:[#allocation2 + $0x84] sm:$0xe] }
 0x14a   : > { %v1339_v40 = vor.u32 %v1337_v53, %v1336_v3  ;;  %v1420_v0 = vsel %vm4225_vm12, %v1336_v3, 0  ;;  %v2000_v56 = vsel %vm1892_vm4, %v1995_v46, %v1999_v32  ;;  %v2021_v60 = vshll.u32 %v4633_v11, 16  ;;  %v3855_v39 = vld [vmem:[%s5180_s8] sm:$0xff]   ;;  %v1742_v28 = vld [vmem:[#allocation2 + $0x90] sm:$0xe] }
 0x14b   : > { %v3406_v9 = vcombine.low %v1420_v0, %v1420_v0  ;;  %2125 = vrot.lane.b32.xlu1 %v2000_v56, %s3918_s27  ;;  %v2012_v4 = vsel %vm1892_vm4, %v2007_v6, %v2011_v55  ;;  %v2228_v8 = vrot.slane %v4606_v15, 1  ;;  %v2016_v14 = vshll.u32 %v4642_v49, 16  ;;  %v4688_v31 = vld [vmem:[#allocation2 + $0xa4] ss:$0 sps:$4 sm:$0x11]   ;;  %3697 = vmatprep.subr.bf16.mxu0 %v3855_v39 }
 0x14c   : > { %v1402_v44 = vsel %vm4225_vm12, 0, %v1339_v40  ;;  %2127 = vrot.lane.b32.xlu0 %v2012_v4, %s3918_s27  ;;  %v4661_v17 = vcombine.low %v1698_v62, %v4647_v27  ;;  %v2033_v21 = vshll.u32 %v4644_v37, 16  ;;  %v3456_v41 = vcombine.low %v1740_v43, %v4631_v36  ;;  %v1743_v53 = vld [vmem:[#allocation2 + $0x9c] sm:$0xe]  ;;  %v1704_v46 = vld [vmem:[#allocation2 + $0xa8] sm:$0xf]  ;;  %3698 = vmatpush3.bf16.msra.mxu0 %v3855_v39 }
 0x14d   : > { %v3404_v20 = vcombine.low %v1402_v44, %v1402_v44  ;;  %v3405_v25 = vcombine.high %v1402_v44, %v1402_v44  ;;  %1672 = vst.msk [vmem:[#allocation2 + $0xc8] sm:$0x1] %vm1623_vm7, %v3406_v9  ;;  %v2226_v15 = vsel %vm2199_vm2, %v2224_v52, %v2225_v61  ;;  %v2014_v42 = vshrl.u32 %v4642_v49, 16  ;;  %v1706_v6 = vld [vmem:[#allocation2 + $0xb4] sm:$0xf] }
 0x14e   : > { %v2018_v16 = vrot.slane %v2016_v14, 1  ;;  %v2028_v22 = vshll.u32 %v4661_v17, 16  ;;  %v2229_v35 = vsel %vm2199_vm2, %v2227_v10, %v2228_v8  ;;  %v2023_v12 = vrot.slane %v2021_v60, 1  ;;  %v4696_v55 = vld [vmem:[#allocation2 + $0xb8] sm:$0xf] }
 0x14f   : > { %1670 = vst.msk [vmem:[#allocation2 + $0xc0] sm:$0xf] %vm1620_vm9, %v3404_v20  ;;  %1671 = vst.msk [vmem:[#allocation2 + $0xc4] sm:$0xf] %vm1620_vm9, %v3405_v25  ;;  %2270 = vrot.lane.b32.xlu1 %v2226_v15, %s3917_s24  ;;  %v2026_v38 = vshrl.u32 %v4661_v17, 16  ;;  %v3457_v13 = vcombine.low %v1741_v47, %v4647_v27  ;;  %v4686_v36 = vcombine.low %v1700_v24, %v4668_v34  ;;  %v2035_v51 = vrot.slane %v2033_v21, 1 }
 0x150   : > { %2272 = vrot.lane.b32.xlu0 %v2229_v35, %s3917_s24  ;;  %v2019_v45 = vor.u32 %v2018_v16, %v2014_v42  ;;  %v2030_v23 = vrot.slane %v2028_v22, 1  ;;  %v2230_v54 = vrot.slane %v3456_v41, 1  ;;  %v4691_v32 = vcombine.low %v1702_v57, %v4663_v7  ;;  %v4702_v40 = vld [vmem:[#allocation2 + $0xac] sm:$0xf]  ;;  %v1676_v15 = vld [vmem:[#allocation2] sm:$0xf] }
 0x151   : > { %v2040_v59 = vshll.u32 %v4686_v36, 16  ;;  %v2045_v3 = vshll.u32 %v4673_v19, 16  ;;  %v2231_v61 = vrot.slane %v4633_v11, 1  ;;  %v2234_v62 = vrot.slane %v4644_v37, 1  ;;  %v4726_v42 = vld [vmem:[#allocation2 + $0x4] sm:$0xf] }
 0x152   : > { %v2024_v58 = vsel %vm1892_vm4, %v2019_v45, %v2023_v12  ;;  %v2031_v2 = vor.u32 %v2030_v23, %v2026_v38  ;;  %v2052_v27 = vshll.u32 %v4691_v32, 16  ;;  %v2233_v56 = vrot.slane %v3457_v13, 1  ;;  %v4714_v8 = vld [vmem:[#allocation2 + $0xb0] ss:$0 sps:$4 sm:$0x11]  }
 0x153   : > { %2129 = vrot.lane.b32.xlu1 %v2024_v58, %s3918_s27  ;;  %v2038_v52 = vshrl.u32 %v4686_v36, 16  ;;  %v2042_v43 = vrot.slane %v2040_v59, 1  ;;  %v2232_v9 = vsel %vm2199_vm2, %v2230_v54, %v2231_v61  ;;  %v2057_v10 = vshll.u32 %v4688_v31, 16  ;;  %v3836_v22 = vld [vmem:[#allocation2 + $0xbc] ss:$0 sps:$4 sm:$0x11]  }
 0x154   : > { %v2036_v0 = vsel %vm1892_vm4, %v2031_v2, %v2035_v51  ;;  %v2054_v4 = vrot.slane %v2052_v27, 1  ;;  %v3458_v11 = vcombine.low %v1742_v28, %v4668_v34  ;;  %v2047_v60 = vrot.slane %v2045_v3, 1  ;;  %v1744_v45 = vld [vmem:[#allocation2 + $0xa8] sm:$0xe]  ;;  %v1745_v2 = vld [vmem:[#allocation2 + $0xb4] sm:$0xe] }
 0x155   : > { %2131 = vrot.lane.b32.xlu0 %v2036_v0, %s3918_s27  ;;  %v2043_v37 = vor.u32 %v2042_v43, %v2038_v52  ;;  %v2050_v47 = vshrl.u32 %v4691_v32, 16  ;;  %v4712_v44 = vcombine.low %v1704_v46, %v4702_v40  ;;  %v3459_v14 = vcombine.low %v1743_v53, %v4663_v7  ;;  %v4745_v61 = vld [vmem:[#allocation2 + $0xd0] sm:$0xf] }
 0x156   : > { %v4719_v57 = vcombine.low %v1706_v6, %v4696_v55  ;;  %v2235_v20 = vsel %vm2199_vm2, %v2233_v56, %v2234_v62  ;;  %v1708_v24 = vld [vmem:[#allocation2 + $0xc0] sm:$0xf]  ;;  %v4724_v34 = vld [vmem:[#allocation2 + $0xc4] sm:$0xf]  ;;  %v2059_v16 = vrot.slane %v2057_v10, 1  ;;  %v2236_v7 = vrot.slane %v3458_v11, 1 }
 0x157   : > { %2274 = vrot.lane.b32.xlu1 %v2232_v9, %s3917_s24  ;;  %v2048_v25 = vsel %vm1892_vm4, %v2043_v37, %v2047_v60  ;;  %v2055_v21 = vor.u32 %v2054_v4, %v2050_v47  ;;  %v2064_v41 = vshll.u32 %v4712_v44, 16  ;;  %v2062_v35 = vshrl.u32 %v4712_v44, 16  ;;  %v1710_v6 = vld [vmem:[#allocation2 + $0xcc] sm:$0xf] }
 0x158   : > { %v2069_v38 = vshll.u32 %v4714_v8, 16  ;;  %v2076_v39 = vshll.u32 %v4719_v57, 16  ;;  %v2239_v23 = vrot.slane %v3459_v14, 1  ;;  %v4734_v13 = vcombine.low %v1708_v24, %v4724_v34  ;;  %v3840_v56 = vld [vmem:[#allocation2 + $0xc8] ss:$0 sps:$4 sm:$0x11]  }
 0x159   : > { %2276 = vrot.lane.b32.xlu0 %v2235_v20, %s3917_s24  ;;  %v2066_v12 = vrot.slane %v2064_v41, 1  ;;  %v2060_v51 = vsel %vm1892_vm4, %v2055_v21, %v2059_v16  ;;  %v2237_v54 = vrot.slane %v4673_v19, 1  ;;  %v2240_v59 = vrot.slane %v4688_v31, 1  ;;  %v3842_v14 = vld [vmem:[#allocation2 + $0x8] ss:$0 sps:$4 sm:$0x11]  }
 0x15a   : > { %v2078_v58 = vrot.slane %v2076_v39, 1  ;;  %v3460_v3 = vcombine.low %v1744_v45, %v4702_v40  ;;  %v2088_v53 = vshll.u32 %v4734_v13, 16  ;;  %v4743_v46 = vcombine.low %v1676_v15, %v4726_v42  ;;  %v1730_v45 = vld [vmem:[#allocation2] sm:$0xe] }
 0x15b   : > { %2133 = vrot.lane.b32.xlu1 %v2048_v25, %s3918_s27  ;;  %v2067_v28 = vor.u32 %v2066_v12, %v2062_v35  ;;  %v2238_v62 = vsel %vm2199_vm2, %v2236_v7, %v2237_v54  ;;  %v2071_v19 = vrot.slane %v2069_v38, 1  ;;  %v2074_v27 = vshrl.u32 %v4719_v57, 16  ;;  %v1746_v25 = vld [vmem:[#allocation2 + $0xc0] sm:$0xe] }
 0x15c   : > { %v2081_v0 = vshll.u32 %v3836_v22, 16  ;;  %v2241_v31 = vsel %vm2199_vm2, %v2239_v23, %v2240_v59  ;;  %v3461_v40 = vcombine.low %v1745_v2, %v4696_v55  ;;  %v2090_v9 = vrot.slane %v2088_v53, 1  ;;  %v3845_v35 = vld [vmem:[#allocation2 + $0xd4] ss:$0 sps:$4 sm:$0x11]  }
 0x15d   : > { %2135 = vrot.lane.b32.xlu0 %v2060_v51, %s3918_s27  ;;  %v2072_v52 = vsel %vm1892_vm4, %v2067_v28, %v2071_v19  ;;  %v2079_v43 = vor.u32 %v2078_v58, %v2074_v27  ;;  %v1896_v4 = vshll.u32 %v4743_v46, 16  ;;  %v2242_v10 = vrot.slane %v3460_v3, 1 }
 0x15e   : > { %v4756_v11 = vcombine.low %v1710_v6, %v4745_v61  ;;  %v2083_v37 = vrot.slane %v2081_v0, 1  ;;  %v2086_v60 = vshrl.u32 %v4734_v13, 16  ;;  %v2093_v47 = vshll.u32 %v3840_v56, 16 }
 0x15f   : > { %2278 = vrot.lane.b32.xlu1 %v2238_v62, %s3917_s24  ;;  %v2243_v55 = vrot.slane %v4714_v8, 1  ;;  %v2245_v20 = vrot.slane %v3461_v40, 1  ;;  %v1898_v24 = vrot.slane %v1896_v4, 1  ;;  %v2246_v7 = vrot.slane %v3836_v22, 1 }
 0x160   : > { %v2084_v21 = vsel %vm1892_vm4, %v2079_v43, %v2083_v37  ;;  %v2091_v41 = vor.u32 %v2090_v9, %v2086_v60  ;;  %v2100_v15 = vshll.u32 %v4756_v11, 16  ;;  %v2095_v12 = vrot.slane %v2093_v47, 1 }
 0x161   : > { %2280 = vrot.lane.b32.xlu0 %v2241_v31, %s3917_s24  ;;  %v2244_v16 = vsel %vm2199_vm2, %v2242_v10, %v2243_v55  ;;  %v1894_v38 = vshrl.u32 %v4743_v46, 16  ;;  %v1901_v39 = vshll.u32 %v3842_v14, 16  ;;  %v3462_v8 = vcombine.low %v1746_v25, %v4724_v34  ;;  %v1747_v34 = vld [vmem:[#allocation2 + $0xcc] sm:$0xe]  ;;  %v3854_v55 = vld [vmem:[%s5180_s8 + $0x38] sm:$0xff]  }
 0x162   : > { %v2247_v23 = vsel %vm2199_vm2, %v2245_v20, %v2246_v7  ;;  %v2096_v51 = vsel %vm1892_vm4, %v2091_v41, %v2095_v12  ;;  %v2102_v28 = vrot.slane %v2100_v15, 1  ;;  %v2105_v58 = vshll.u32 %v3845_v35, 16 }
 0x163   : > { %2137 = vrot.lane.b32.xlu1 %v2072_v52, %s3918_s27  ;;  %v1899_v54 = vor.u32 %v1898_v24, %v1894_v38  ;;  %v1903_v22 = vrot.slane %v1901_v39, 1  ;;  %v2248_v2 = vrot.slane %v3462_v8, 1  ;;  %v2098_v59 = vshrl.u32 %v4756_v11, 16 }
 0x164   : > { %v3446_v3 = vcombine.low %v1730_v45, %v4726_v42  ;;  %v2249_v6 = vrot.slane %v3840_v56, 1  ;;  %v2107_v27 = vrot.slane %v2105_v58, 1  ;;  %v3463_v31 = vcombine.low %v1747_v34, %v4745_v61 }
 0x165   : > { %2139 = vrot.lane.b32.xlu0 %v2084_v21, %s3918_s27  ;;  %v1904_v53 = vsel %vm1892_vm4, %v1899_v54, %v1903_v22  ;;  %v2103_v62 = vor.u32 %v2102_v28, %v2098_v59  ;;  %v2201_v42 = vrot.slane %v3842_v14, 1  ;;  %v2252_v56 = vrot.slane %v3845_v35, 1 }
 0x166   : > { %v2250_v19 = vsel %vm2199_vm2, %v2248_v2, %v2249_v6  ;;  %v2200_v0 = vrot.slane %v3446_v3, 1  ;;  %v2251_v43 = vrot.slane %v3463_v31, 1  ;;  %vm2290_vm7 = vcmask 130048  }
 0x167   : > { %2282 = vrot.lane.b32.xlu1 %v2244_v16, %s3917_s24  ;;  %v2108_v40 = vsel %vm1892_vm4, %v2103_v62, %v2107_v27  ;;  %vm2327_vm9 = vcmask 261120   ;;  %vm2395_vm12 = vcmask 392192  }
 0x168   : > { %v2202_v52 = vsel %vm2199_vm2, %v2200_v0, %v2201_v42  ;;  %v2253_v9 = vsel %vm2199_vm2, %v2251_v43, %v2252_v56  ;;  %vm3150_vm2 = vcmask 64512  }
 0x169   : > { %2284 = vrot.lane.b32.xlu0 %v2247_v23, %s3917_s24 }
 0x16b   : > { %2141 = vrot.lane.b32.xlu1 %v2096_v51, %s3918_s27 }
 0x16d   : > { %2109 = vrot.lane.b32.xlu0 %v1904_v53, %s3918_s27 }
 0x16f   : > { %2286 = vrot.lane.b32.xlu1 %v2250_v19, %s3917_s24 }
 0x171   : > { %2143 = vrot.lane.b32.xlu0 %v2108_v40, %s3918_s27 }
 0x173   : > { %2254 = vrot.lane.b32.xlu1 %v2202_v52, %s3917_s24 }
 0x177   : > { %2288 = vrot.lane.b32.xlu1 %v2253_v9, %s3917_s24 }
 0x178   : > { %v2257_v4 = vpop.permute.xlu1 %2256 }
 0x17f   : > { %v2112_v61 = vpop.permute.xlu0 %2111 }
 0x180   : > { %v2294_v10 = vsel %vm2290_vm7, %v4335_v33, %v2112_v61  ;;  %v3856_v33 = vld [vmem:[%s5180_s8 + $0x30] sm:$0xff]  }
 0x181   : > { %v4788_v37 = vsel %vm2327_vm9, %v2294_v10, %v2257_v4 }
 0x182   : > { %3661 = vmatprep.mubr.msk.bf16.mxu1 %vm2395_vm12, %v4788_v37 }
 0x186   : > { %v2259_v47 = vpop.permute.xlu1 %2258 }
 0x190   : > { %v2114_v60 = vpop.permute.xlu0 %2113 }
 0x191   : > { %v2296_v14 = vsel %vm2290_vm7, %v4395_v48, %v2114_v60 }
 0x192   : > { %v4798_v20 = vsel %vm2327_vm9, %v2296_v14, %v2259_v47 }
 0x193   : > { %3662 = vmatmul.mubr.msk.bf16.vlgmr.msra.gmra.mxu1 %vm2395_vm12, %v4798_v20 }
 0x194   : > { %3732 = vmatpush3.bf16.msra.mxu1 %v4427_v18 }
 0x195   : > { %3733 = vmatprep.subr.bf16.mxu1 %v3854_v55 }
 0x197   : > { %v2116_v25 = vpop.permute.xlu0 %2115 }
 0x198   : > { %3734 = vmatpush3.bf16.msra.mxu1 %v3854_v55  ;;  %v2298_v48 = vsel %vm2290_vm7, %v4434_v29, %v2116_v25 }
 0x199   : > { %3735 = vmatprep.subr.bf16.mxu1 %v3856_v33 }
 0x19b   : > { %v2261_v21 = vpop.permute.xlu0 %2260 }
 0x19c   : > { %v4809_v41 = vsel %vm2327_vm9, %v2298_v48, %v2261_v21  ;;  %3736 = vmatpush3.bf16.msra.mxu1 %v3856_v33 }
 0x19d   : > { %3665 = vmatprep.mubr.msk.bf16.mxu1 %vm2395_vm12, %v4809_v41 }
 0x1a0   : > { %v2118_v18 = vpop.permute.xlu1 %2117 }
 0x1a1   : > { %v2300_v24 = vsel %vm2290_vm7, %v4479_v30, %v2118_v18 }
 0x1a4   : > { %v2120_v15 = vpop.permute.xlu0 %2119  ;;  %v2263_v16 = vpop.permute.xlu1 %2262 }
 0x1a5   : > { %v4816_v7 = vsel %vm2327_vm9, %v2300_v24, %v2263_v16  ;;  %v2302_v29 = vsel %vm2290_vm7, %v4486_v50, %v2120_v15 }
 0x1a6   : > { %3666 = vmatmul.mubr.msk.bf16.gmra.mxu1 %vm2395_vm12, %v4816_v7 }
 0x1a8   : > { %v2265_v35 = vpop.permute.xlu0 %2264 }
 0x1a9   : > { %v4823_v12 = vsel %vm2327_vm9, %v2302_v29, %v2265_v35 }
 0x1aa   : > { %3669 = vmatprep.mubr.msk.bf16.mxu1 %vm2395_vm12, %v4823_v12 }
 0x1ae   : > { %v2122_v38 = vpop.permute.xlu1 %2121 }
 0x1af   : > { %v2304_v30 = vsel %vm2290_vm7, %v4550_v63, %v2122_v38 }
 0x1b2   : > { %v2267_v39 = vpop.permute.xlu1 %2266 }
 0x1b3   : > { %v2124_v8 = vpop.permute.xlu0 %2123  ;;  %v4830_v45 = vsel %vm2327_vm9, %v2304_v30, %v2267_v39 }
 0x1b4   : > { %3670 = vmatmul.mubr.msk.bf16.gmra.mxu1 %vm2395_vm12, %v4830_v45  ;;  %v2306_v50 = vsel %vm2290_vm7, %v4569_v26, %v2124_v8 }
 0x1b7   : > { %v2269_v23 = vpop.permute.xlu0 %2268 }
 0x1b8   : > { %v4837_v51 = vsel %vm2327_vm9, %v2306_v50, %v2269_v23 }
 0x1b9   : > { %3673 = vmatprep.mubr.msk.bf16.mxu1 %vm2395_vm12, %v4837_v51 }
 0x1bd   : > { %v2126_v54 = vpop.permute.xlu1 %2125 }
 0x1be   : > { %v2128_v63 = vpop.permute.xlu0 %2127  ;;  %v2308_v28 = vsel %vm2290_vm7, %v4611_v5, %v2126_v54 }
 0x1bf   : > { %v2310_v22 = vsel %vm2290_vm7, %v4619_v1, %v2128_v63 }
 0x1c1   : > { %v2271_v58 = vpop.permute.xlu1 %2270 }
 0x1c2   : > { %v2345_v2 = vsel %vm2327_vm9, %v2308_v28, %v2271_v58  ;;  %v2273_v59 = vpop.permute.xlu0 %2272 }
 0x1c3   : > { %3674 = vmatmul.mubr.msk.bf16.gmra.mxu1 %vm2395_vm12, %v2345_v2  ;;  %v2347_v26 = vsel %vm2327_vm9, %v2310_v22, %v2273_v59 }
 0x1c4   : > { %3677 = vmatprep.mubr.msk.bf16.mxu1 %vm2395_vm12, %v2347_v26 }
 0x1c5   : > { %v2130_v3 = vpop.permute.xlu1 %2129 }
 0x1c6   : > { %v2312_v53 = vsel %vm2290_vm7, %v4642_v49, %v2130_v3 }
 0x1c7   : > { %v2132_v34 = vpop.permute.xlu0 %2131 }
 0x1c8   : > { %v2314_v1 = vsel %vm2290_vm7, %v4661_v17, %v2132_v34 }
 0x1c9   : > { %v2275_v6 = vpop.permute.xlu1 %2274 }
 0x1ca   : > { %v2349_v5 = vsel %vm2327_vm9, %v2312_v53, %v2275_v6 }
 0x1cb   : > { %3678 = vmatmul.mubr.msk.bf16.gmra.mxu1 %vm2395_vm12, %v2349_v5  ;;  %v2277_v62 = vpop.permute.xlu0 %2276 }
 0x1cc   : > { %v2351_v19 = vsel %vm2327_vm9, %v2314_v1, %v2277_v62 }
 0x1cd   : > { %v2134_v27 = vpop.permute.xlu1 %2133  ;;  %3681 = vmatprep.mubr.msk.bf16.mxu1 %vm2395_vm12, %v2351_v19 }
 0x1ce   : > { %v2316_v31 = vsel %vm2290_vm7, %v4686_v36, %v2134_v27 }
 0x1cf   : > { %v2136_v0 = vpop.permute.xlu0 %2135 }
 0x1d0   : > { %v2318_v42 = vsel %vm2290_vm7, %v4691_v32, %v2136_v0 }
 0x1d1   : > { %v2279_v40 = vpop.permute.xlu1 %2278 }
 0x1d2   : > { %v2353_v49 = vsel %vm2327_vm9, %v2316_v31, %v2279_v40 }
 0x1d3   : > { %3682 = vmatmul.mubr.msk.bf16.gmra.mxu1 %vm2395_vm12, %v2353_v49  ;;  %v2281_v17 = vpop.permute.xlu0 %2280 }
 0x1d4   : > { %v2355_v52 = vsel %vm2327_vm9, %v2318_v42, %v2281_v17 }
 0x1d5   : > { %v2138_v43 = vpop.permute.xlu1 %2137  ;;  %3685 = vmatprep.mubr.msk.bf16.mxu1 %vm2395_vm12, %v2355_v52 }
 0x1d6   : > { %v2320_v9 = vsel %vm2290_vm7, %v4712_v44, %v2138_v43 }
 0x1d7   : > { %v2140_v56 = vpop.permute.xlu0 %2139 }
 0x1d8   : > { %v2322_v4 = vsel %vm2290_vm7, %v4719_v57, %v2140_v56 }
 0x1d9   : > { %v2283_v61 = vpop.permute.xlu1 %2282 }
 0x1da   : > { %v2357_v36 = vsel %vm2327_vm9, %v2320_v9, %v2283_v61 }
 0x1db   : > { %3686 = vmatmul.mubr.msk.bf16.gmra.mxu1 %vm2395_vm12, %v2357_v36  ;;  %v2285_v32 = vpop.permute.xlu0 %2284 }
 0x1dc   : > { %v2359_v10 = vsel %vm2327_vm9, %v2322_v4, %v2285_v32 }
 0x1dd   : > { %v2142_v60 = vpop.permute.xlu1 %2141  ;;  %3689 = vmatprep.mubr.msk.bf16.mxu1 %vm2395_vm12, %v2359_v10 }
 0x1de   : > { %v2324_v47 = vsel %vm2290_vm7, %v4734_v13, %v2142_v60 }
 0x1df   : > { %v2110_v55 = vpop.permute.xlu0 %2109 }
 0x1e0   : > { %v2292_v57 = vsel %vm2290_vm7, %v4743_v46, %v2110_v55 }
 0x1e1   : > { %v2287_v14 = vpop.permute.xlu1 %2286 }
 0x1e2   : > { %v2361_v44 = vsel %vm2327_vm9, %v2324_v47, %v2287_v14 }
 0x1e3   : > { %3690 = vmatmul.mubr.msk.bf16.gmra.mxu1 %vm2395_vm12, %v2361_v44  ;;  %v2144_v13 = vpop.permute.xlu0 %2143 }
 0x1e4   : > { %3737 = vmatprep.mubr.msk.bf16.mxu1 %vm2395_vm12, %v4798_v20 }
 0x1e5   : > { %v2255_v33 = vpop.permute.xlu1 %2254 }
 0x1e6   : > { %v2329_v25 = vsel %vm2327_vm9, %v2292_v57, %v2255_v33 }
 0x1e7   : > { %3699 = vmatprep.mubr.msk.bf16.mxu0 %vm2395_vm12, %v2329_v25 }
 0x1e8   : > { %3700 = vmatmul.mubr.msk.bf16.vlgmr.msra.gmra.mxu0 %vm2395_vm12, %v4788_v37  ;;  %v2326_v37 = vsel %vm2290_vm7, %v4756_v11, %v2144_v13 }
 0x1e9   : > { %3703 = vmatprep.mubr.msk.bf16.mxu0 %vm2395_vm12, %v4798_v20  ;;  %v2289_v46 = vpop.permute.xlu1 %2288 }
 0x1ea   : > { %v2363_v20 = vsel %vm2327_vm9, %v2326_v37, %v2289_v46 }
 0x1eb   : > { %3738 = vmatmul.mubr.msk.bf16.vlgmr.msra.gmra.mxu1 %vm2395_vm12, %v4809_v41 }
 0x1ec   : > { %3741 = vmatprep.mubr.msk.bf16.mxu1 %vm2395_vm12, %v4816_v7 }
 0x1f0   : > { %3704 = vmatmul.mubr.msk.bf16.gmra.mxu0 %vm2395_vm12, %v4809_v41 }
 0x1f1   : > { %3707 = vmatprep.mubr.msk.bf16.mxu0 %vm2395_vm12, %v4816_v7 }
 0x1f3   : > { %3742 = vmatmul.mubr.msk.bf16.gmra.mxu1 %vm2395_vm12, %v4823_v12 }
 0x1f4   : > { %3745 = vmatprep.mubr.msk.bf16.mxu1 %vm2395_vm12, %v4830_v45 }
 0x1f8   : > { %3708 = vmatmul.mubr.msk.bf16.gmra.mxu0 %vm2395_vm12, %v4823_v12 }
 0x1f9   : > { %3711 = vmatprep.mubr.msk.bf16.mxu0 %vm2395_vm12, %v4830_v45 }
 0x1fb   : > { %3746 = vmatmul.mubr.msk.bf16.gmra.mxu1 %vm2395_vm12, %v4837_v51 }
 0x1fc   : > { %3749 = vmatprep.mubr.msk.bf16.mxu1 %vm2395_vm12, %v2345_v2 }
 0x200   : > { %3712 = vmatmul.mubr.msk.bf16.gmra.mxu0 %vm2395_vm12, %v4837_v51 }
 0x201   : > { %3715 = vmatprep.mubr.msk.bf16.mxu0 %vm2395_vm12, %v2345_v2 }
 0x203   : > { %3750 = vmatmul.mubr.msk.bf16.gmra.mxu1 %vm2395_vm12, %v2347_v26 }
 0x204   : > { %3753 = vmatprep.mubr.msk.bf16.mxu1 %vm2395_vm12, %v2349_v5 }
 0x208   : > { %3716 = vmatmul.mubr.msk.bf16.gmra.mxu0 %vm2395_vm12, %v2347_v26 }
 0x209   : > { %3719 = vmatprep.mubr.msk.bf16.mxu0 %vm2395_vm12, %v2349_v5 }
 0x20b   : > { %3754 = vmatmul.mubr.msk.bf16.gmra.mxu1 %vm2395_vm12, %v2351_v19 }
 0x20c   : > { %3757 = vmatprep.mubr.msk.bf16.mxu1 %vm2395_vm12, %v2353_v49 }
 0x210   : > { %3720 = vmatmul.mubr.msk.bf16.gmra.mxu0 %vm2395_vm12, %v2351_v19 }
 0x211   : > { %3723 = vmatprep.mubr.msk.bf16.mxu0 %vm2395_vm12, %v2353_v49 }
 0x213   : > { %3758 = vmatmul.mubr.msk.bf16.gmra.mxu1 %vm2395_vm12, %v2355_v52 }
 0x214   : > { %3761 = vmatprep.mubr.msk.bf16.mxu1 %vm2395_vm12, %v2357_v36 }
 0x218   : > { %3724 = vmatmul.mubr.msk.bf16.gmra.mxu0 %vm2395_vm12, %v2355_v52 }
 0x219   : > { %3727 = vmatprep.mubr.msk.bf16.mxu0 %vm2395_vm12, %v2357_v36 }
 0x21b   : > { %3762 = vmatmul.mubr.msk.bf16.gmra.mxu1 %vm2395_vm12, %v2359_v10 }
 0x21c   : > { %3765 = vmatprep.mubr.msk.bf16.mxu1 %vm2395_vm12, %v2361_v44 }
 0x220   : > { %3728 = vmatmul.mubr.msk.bf16.gmra.mxu0 %vm2395_vm12, %v2359_v10 }
 0x223   : > { %3766 = vmatmul.mubr.msk.bf16.gmra.mxu1 %vm2395_vm12, %v2363_v20 }
 0x253   : > { %v3663_v48 = vpop.f32.mrf.mxu1 }
 0x255   : > { %v2462_v21 = vpop.f32.mrf.mxu1 }
 0x257   : > { %v3664_v41 = vpop.f32.mrf.mxu1 }
 0x259   : > { %v2465_v18 = vpop.f32.mrf.mxu1 }
 0x266   : > { %v3667_v24 = vpop.f32.mrf.mxu1 }
 0x268   : > { %v2478_v15 = vpop.f32.mrf.mxu1 }
 0x26a   : > { %v3668_v16 = vpop.f32.mrf.mxu1 }
 0x26c   : > { %v2481_v7 = vpop.f32.mrf.mxu1 }
 0x274   : > { %v3671_v29 = vpop.f32.mrf.mxu1 }
 0x276   : > { %v4928_v35 = vpop.f32.mrf.mxu1 }
 0x278   : > { %v4930_v12 = vpop.f32.mrf.mxu1 }
 0x27a   : > { %v4932_v38 = vpop.f32.mrf.mxu1 }
 0x283   : > { %v4934_v11 = vpop.f32.mrf.mxu1 }
 0x285   : > { %v4936_v30 = vpop.f32.mrf.mxu1 }
 0x287   : > { %v4938_v39 = vpop.f32.mrf.mxu1 }
 0x289   : > { %v4940_v8 = vpop.f32.mrf.mxu1 }
 0x28b   : > { %v4942_v45 = vpop.f32.mrf.mxu1 }
 0x28d   : > { %v4944_v50 = vpop.f32.mrf.mxu1 }
 0x28f   : > { %v4946_v23 = vpop.f32.mrf.mxu1 }
 0x291   : > { %v4948_v51 = vpop.f32.mrf.mxu1 }
 0x293   : > { %v4950_v54 = vpop.f32.mrf.mxu1 }
 0x295   : > { %v4952_v63 = vpop.f32.mrf.mxu1 }
 0x297   : > { %v4954_v28 = vpop.f32.mrf.mxu1 }
 0x299   : > { %v4956_v58 = vpop.f32.mrf.mxu1 }
 0x29b   : > { %v4958_v22 = vpop.f32.mrf.mxu1 }
 0x29d   : > { %v4960_v2 = vpop.f32.mrf.mxu1 }
 0x29f   : > { %v4962_v59 = vpop.f32.mrf.mxu1 }
 0x2a1   : > { %v4964_v26 = vpop.f32.mrf.mxu1 }
 0x2a3   : > { %v4966_v3 = vpop.f32.mrf.mxu1 }
 0x2a5   : > { %v4968_v34 = vpop.f32.mrf.mxu1 }
 0x2a7   : > { %v4970_v53 = vpop.f32.mrf.mxu1 }
 0x2a8   : > { %v3701_v6 = vpop.f32.mrf.mxu0 }
 0x2a9   : > { %v2652_v5 = vadd.f32 %v3701_v6, %v3663_v48  ;;  %v4972_v1 = vpop.f32.mrf.mxu1 }
 0x2aa   : > { %v2643_v62 = vpop.f32.mrf.mxu0 }
 0x2ab   : > { %v3739_v19 = vpop.f32.mrf.mxu1  ;;  %v2644_v27 = vadd.f32 %v2643_v62, %v2462_v21 }
 0x2ac   : > { %v2960_v0 = vadd.f32 %v3739_v19, %v2652_v5  ;;  %v3702_v31 = vpop.f32.mrf.mxu0 }
 0x2ad   : > { %v2655_v40 = vadd.f32 %v3702_v31, %v3664_v41  ;;  %v2831_v49 = vpop.f32.mrf.mxu1 }
 0x2ae   : > { %3026 = vrot.lane.b32.xlu0 %v2960_v0, %s3919_s26  ;;  %v2646_v42 = vpop.f32.mrf.mxu0  ;;  %v2958_v52 = vadd.f32 %v2831_v49, %v2644_v27 }
 0x2af   : > { %v3740_v17 = vpop.f32.mrf.mxu1  ;;  %v2647_v43 = vadd.f32 %v2646_v42, %v2465_v18 }
 0x2b0   : > { %v2961_v56 = vadd.f32 %v3740_v17, %v2655_v40  ;;  %v3705_v9 = vpop.f32.mrf.mxu0 }
 0x2b1   : > { %v2668_v61 = vadd.f32 %v3705_v9, %v3667_v24  ;;  %v2834_v36 = vpop.f32.mrf.mxu1 }
 0x2b2   : > { %3028 = vrot.lane.b32.xlu1 %v2961_v56, %s3919_s26  ;;  %v2659_v4 = vpop.f32.mrf.mxu0  ;;  %3022 = vrot.lane.b32.xlu0 %v2958_v52, %s3919_s26  ;;  %v2959_v10 = vadd.f32 %v2834_v36, %v2647_v43 }
 0x2b3   : > { %v3743_v32 = vpop.f32.mrf.mxu1  ;;  %v2660_v60 = vadd.f32 %v2659_v4, %v2478_v15 }
 0x2b4   : > { %v2964_v47 = vadd.f32 %v3743_v32, %v2668_v61  ;;  %v3706_v14 = vpop.f32.mrf.mxu0 }
 0x2b5   : > { %v2671_v55 = vadd.f32 %v3706_v14, %v3668_v16  ;;  %v2847_v44 = vpop.f32.mrf.mxu1 }
 0x2b6   : > { %v2662_v57 = vpop.f32.mrf.mxu0  ;;  %3024 = vrot.lane.b32.xlu1 %v2959_v10, %s3919_s26  ;;  %3034 = vrot.lane.b32.xlu0 %v2964_v47, %s3919_s26  ;;  %v2962_v25 = vadd.f32 %v2847_v44, %v2660_v60 }
 0x2b7   : > { %v3744_v33 = vpop.f32.mrf.mxu1  ;;  %v2663_v13 = vadd.f32 %v2662_v57, %v2481_v7 }
 0x2b8   : > { %v2965_v46 = vadd.f32 %v3744_v33, %v2671_v55  ;;  %v3709_v37 = vpop.f32.mrf.mxu0 }
 0x2b9   : > { %v2684_v20 = vadd.f32 %v3709_v37, %v3671_v29  ;;  %v2850_v48 = vpop.f32.mrf.mxu1 }
 0x2ba   : > { %v2675_v21 = vpop.f32.mrf.mxu0  ;;  %3036 = vrot.lane.b32.xlu1 %v2965_v46, %s3919_s26  ;;  %3030 = vrot.lane.b32.xlu0 %v2962_v25, %s3919_s26  ;;  %v2963_v18 = vadd.f32 %v2850_v48, %v2663_v13 }
 0x2bb   : > { %v3747_v41 = vpop.f32.mrf.mxu1  ;;  %v2676_v24 = vadd.f32 %v2675_v21, %v4928_v35 }
 0x2bc   : > { %v2968_v15 = vadd.f32 %v3747_v41, %v2684_v20  ;;  %v3710_v16 = vpop.f32.mrf.mxu0 }
 0x2bd   : > { %v2687_v6 = vadd.f32 %v3710_v16, %v4930_v12  ;;  %v2863_v5 = vpop.f32.mrf.mxu1 }
 0x2be   : > { %v2678_v62 = vpop.f32.mrf.mxu0  ;;  %3032 = vrot.lane.b32.xlu1 %v2963_v18, %s3919_s26  ;;  %3042 = vrot.lane.b32.xlu0 %v2968_v15, %s3919_s26  ;;  %v2966_v29 = vadd.f32 %v2863_v5, %v2676_v24 }
 0x2bf   : > { %v3748_v7 = vpop.f32.mrf.mxu1  ;;  %v2679_v19 = vadd.f32 %v2678_v62, %v4932_v38 }
 0x2c0   : > { %v2969_v27 = vadd.f32 %v3748_v7, %v2687_v6  ;;  %v3713_v0 = vpop.f32.mrf.mxu0 }
 0x2c1   : > { %v2700_v31 = vadd.f32 %v3713_v0, %v4934_v11  ;;  %v2866_v40 = vpop.f32.mrf.mxu1 }
 0x2c2   : > { %v2691_v35 = vpop.f32.mrf.mxu0  ;;  %3044 = vrot.lane.b32.xlu1 %v2969_v27, %s3919_s26  ;;  %3038 = vrot.lane.b32.xlu0 %v2966_v29, %s3919_s26  ;;  %v2967_v49 = vadd.f32 %v2866_v40, %v2679_v19 }
 0x2c3   : > { %v3751_v12 = vpop.f32.mrf.mxu1  ;;  %v2692_v42 = vadd.f32 %v2691_v35, %v4936_v30 }
 0x2c4   : > { %v2972_v17 = vadd.f32 %v3751_v12, %v2700_v31  ;;  %v3714_v52 = vpop.f32.mrf.mxu0 }
 0x2c5   : > { %v2703_v43 = vadd.f32 %v3714_v52, %v4938_v39  ;;  %v2879_v56 = vpop.f32.mrf.mxu1 }
 0x2c6   : > { %v2694_v38 = vpop.f32.mrf.mxu0  ;;  %3040 = vrot.lane.b32.xlu1 %v2967_v49, %s3919_s26  ;;  %3050 = vrot.lane.b32.xlu0 %v2972_v17, %s3919_s26  ;;  %v2970_v9 = vadd.f32 %v2879_v56, %v2692_v42 }
 0x2c7   : > { %v3752_v11 = vpop.f32.mrf.mxu1  ;;  %v2695_v61 = vadd.f32 %v2694_v38, %v4940_v8 }
 0x2c8   : > { %v2973_v36 = vadd.f32 %v3752_v11, %v2703_v43  ;;  %v3717_v4 = vpop.f32.mrf.mxu0 }
 0x2c9   : > { %v2716_v32 = vadd.f32 %v3717_v4, %v4942_v45  ;;  %v2882_v10 = vpop.f32.mrf.mxu1 }
 0x2ca   : > { %v2707_v30 = vpop.f32.mrf.mxu0  ;;  %3052 = vrot.lane.b32.xlu1 %v2973_v36, %s3919_s26  ;;  %3046 = vrot.lane.b32.xlu0 %v2970_v9, %s3919_s26  ;;  %v2971_v60 = vadd.f32 %v2882_v10, %v2695_v61 }
 0x2cb   : > { %v3755_v39 = vpop.f32.mrf.mxu1  ;;  %v2708_v47 = vadd.f32 %v2707_v30, %v4944_v50 }
 0x2cc   : > { %v2976_v14 = vadd.f32 %v3755_v39, %v2716_v32  ;;  %v3718_v55 = vpop.f32.mrf.mxu0 }
 0x2cd   : > { %v2719_v44 = vadd.f32 %v3718_v55, %v4946_v23  ;;  %v2895_v57 = vpop.f32.mrf.mxu1 }
 0x2ce   : > { %v2710_v8 = vpop.f32.mrf.mxu0  ;;  %3048 = vrot.lane.b32.xlu1 %v2971_v60, %s3919_s26  ;;  %3058 = vrot.lane.b32.xlu0 %v2976_v14, %s3919_s26  ;;  %v2974_v33 = vadd.f32 %v2895_v57, %v2708_v47  ;;  %v3860_v14 = vld [vmem:[%s4007_s22] sm:$0xff] }
 0x2cf   : > { %v3756_v45 = vpop.f32.mrf.mxu1  ;;  %v2711_v25 = vadd.f32 %v2710_v8, %v4948_v51 }
 0x2d0   : > { %v2977_v13 = vadd.f32 %v3756_v45, %v2719_v44  ;;  %v3721_v46 = vpop.f32.mrf.mxu0  ;;  %v3861_v44 = vld [vmem:[%s4007_s22 + $0x18] sm:$0xff] }
 0x2d1   : > { %v2732_v37 = vadd.f32 %v3721_v46, %v4950_v54  ;;  %v2898_v20 = vpop.f32.mrf.mxu1 }
 0x2d2   : > { %v2723_v50 = vpop.f32.mrf.mxu0  ;;  %3060 = vrot.lane.b32.xlu1 %v2977_v13, %s3919_s26  ;;  %3054 = vrot.lane.b32.xlu0 %v2974_v33, %s3919_s26  ;;  %v2975_v48 = vadd.f32 %v2898_v20, %v2711_v25  ;;  %v3862_v33 = vld [vmem:[%s4007_s22 + $0x30] sm:$0xff]  ;;  %v3863_v13 = vld [vmem:[%s4007_s22 + $0x8] sm:$0xff] }
 0x2d3   : > { %v3759_v23 = vpop.f32.mrf.mxu1  ;;  %v2724_v21 = vadd.f32 %v2723_v50, %v4952_v63  ;;  %v3864_v50 = vld [vmem:[%s4007_s22 + $0x20] sm:$0xff] }
 0x2d4   : > { %v2980_v41 = vadd.f32 %v3759_v23, %v2732_v37  ;;  %v3722_v18 = vpop.f32.mrf.mxu0 }
 0x2d5   : > { %v2735_v24 = vadd.f32 %v3722_v18, %v4954_v28  ;;  %v2911_v15 = vpop.f32.mrf.mxu1 }
 0x2d6   : > { %v2726_v51 = vpop.f32.mrf.mxu0  ;;  %3056 = vrot.lane.b32.xlu1 %v2975_v48, %s3919_s26  ;;  %3066 = vrot.lane.b32.xlu0 %v2980_v41, %s3919_s26  ;;  %v2978_v16 = vadd.f32 %v2911_v15, %v2724_v21  ;;  %v3865_v48 = vld [vmem:[%s4007_s22 + $0x38] sm:$0xff] }
 0x2d7   : > { %v3760_v54 = vpop.f32.mrf.mxu1  ;;  %v2727_v6 = vadd.f32 %v2726_v51, %v4956_v58  ;;  %v3867_v51 = vld [vmem:[%s4007_s22 + $0x28] sm:$0xff] }
 0x2d8   : > { %v2981_v5 = vadd.f32 %v3760_v54, %v2735_v24  ;;  %v3725_v62 = vpop.f32.mrf.mxu0  ;;  %v3866_v24 = vld [vmem:[%s4007_s22 + $0x50] sm:$0xff] }
 0x2d9   : > { %v2748_v7 = vadd.f32 %v3725_v62, %v4958_v22  ;;  %v2914_v29 = vpop.f32.mrf.mxu1 }
 0x2da   : > { %v2739_v63 = vpop.f32.mrf.mxu0  ;;  %3068 = vrot.lane.b32.xlu1 %v2981_v5, %s3919_s26  ;;  %3062 = vrot.lane.b32.xlu0 %v2978_v16, %s3919_s26  ;;  %v2979_v19 = vadd.f32 %v2914_v29, %v2727_v6  ;;  %v3868_v5 = vld [vmem:[%s4007_s22 + $0x40] sm:$0xff] }
 0x2db   : > { %v3763_v28 = vpop.f32.mrf.mxu1  ;;  %v2740_v27 = vadd.f32 %v2739_v63, %v4960_v2 }
 0x2dc   : > { %v2984_v0 = vadd.f32 %v3763_v28, %v2748_v7  ;;  %v3726_v31 = vpop.f32.mrf.mxu0  ;;  %v3869_v7 = vld [vmem:[%s4007_s22 + $0x58] sm:$0xff] }
 0x2dd   : > { %v2751_v40 = vadd.f32 %v3726_v31, %v4962_v59  ;;  %v2927_v35 = vpop.f32.mrf.mxu1 }
 0x2de   : > { %v2742_v58 = vpop.f32.mrf.mxu0  ;;  %3064 = vrot.lane.b32.xlu1 %v2979_v19, %s3919_s26  ;;  %3074 = vrot.lane.b32.xlu0 %v2984_v0, %s3919_s26  ;;  %v2982_v12 = vadd.f32 %v2927_v35, %v2740_v27  ;;  %v3870_v19 = vld [vmem:[%s4007_s22 + $0x70] sm:$0xff]  ;;  %v3871_v0 = vld [vmem:[%s4007_s22 + $0x48] sm:$0xff] }
 0x2df   : > { %v3764_v22 = vpop.f32.mrf.mxu1  ;;  %v2743_v49 = vadd.f32 %v2742_v58, %v4964_v26  ;;  %v3872_v58 = vld [vmem:[%s4007_s22 + $0x60] sm:$0xff] }
 0x2e0   : > { %v2985_v42 = vadd.f32 %v3764_v22, %v2751_v40  ;;  %v3729_v17 = vpop.f32.mrf.mxu0 }
 0x2e1   : > { %v2930_v52 = vpop.f32.mrf.mxu1  ;;  %v2764_v9 = vadd.f32 %v3729_v17, %v4966_v3 }
 0x2e2   : > { %v2755_v43 = vpop.f32.mrf.mxu0  ;;  %3076 = vrot.lane.b32.xlu1 %v2985_v42, %s3919_s26  ;;  %3070 = vrot.lane.b32.xlu0 %v2982_v12, %s3919_s26  ;;  %v2983_v56 = vadd.f32 %v2930_v52, %v2743_v49  ;;  %v3873_v12 = vld [vmem:[%s4007_s22 + $0x78] sm:$0xff]  ;;  %v3874_v52 = vld [vmem:[%s4007_s22 + $0x90] sm:$0xff] }
 0x2e3   : > { %v2756_v2 = vadd.f32 %v2755_v43, %v4968_v34  ;;  %v3767_v59 = vpop.f32.mrf.mxu1 }
 0x2e4   : > { %v3730_v38 = vpop.f32.mrf.mxu0  ;;  %v2988_v34 = vadd.f32 %v3767_v59, %v2764_v9 }
 0x2e5   : > { %v2943_v11 = vpop.f32.mrf.mxu1  ;;  %v2767_v10 = vadd.f32 %v3730_v38, %v4970_v53 }
 0x2e6   : > { %v2986_v61 = vadd.f32 %v2943_v11, %v2756_v2  ;;  %v2758_v36 = vpop.f32.mrf.mxu0  ;;  %3072 = vrot.lane.b32.xlu1 %v2983_v56, %s3919_s26  ;;  %v3875_v2 = vld [vmem:[%s4007_s22 + $0x68] sm:$0xff]  ;;  %v3876_v11 = vld [vmem:[%s4007_s22 + $0x80] sm:$0xff] }
 0x2e7   : > { %v2759_v26 = vadd.f32 %v2758_v36, %v4972_v1  ;;  %v3768_v4 = vpop.f32.mrf.mxu1  ;;  %v3859_v1 = vld [vmem:[%s4007_s22 + $0x10] sm:$0xff] }
 0x2e8   : > { %3078 = vrot.lane.b32.xlu0 %v2986_v61, %s3919_s26  ;;  %v2989_v3 = vadd.f32 %v3768_v4, %v2767_v10  ;;  %v3877_v61 = vld [vmem:[%s4007_s22 + $0x98] sm:$0xff]  ;;  %v3879_v10 = vld [vmem:[%s4007_s22 + $0x88] sm:$0xff] }
 0x2e9   : > { %v2946_v32 = vpop.f32.mrf.mxu1 }
 0x2ea   : > { %v2987_v30 = vadd.f32 %v2946_v32, %v2759_v26  ;;  %v3878_v32 = vld [vmem:[%s4007_s22 + $0xb0] sm:$0xff] }
 0x2ec   : > { %3082 = vrot.lane.b32.xlu0 %v2988_v34, %s3919_s26  ;;  %3080 = vrot.lane.b32.xlu1 %v2987_v30, %s3919_s26 }
 0x2f0   : > { %3084 = vrot.lane.b32.xlu1 %v2989_v3, %s3919_s26 }
 0x320   : > { %v3027_v53 = vpop.permute.xlu0 %3026 }
 0x321   : > { %v3120_v39 = vsel %vm679_vm1, %v3859_v1, %v3027_v53  ;;  %v3880_v1 = vld [vmem:[%s4007_s22 + $0xa0] sm:$0xff] }
 0x322   : > { %3153 = vst.msk [vmem:[%s5033_s29 + $0x10] sm:$0xff] %vm3150_vm2, %v3120_v39 }
 0x324   : > { %v3023_v60 = vpop.permute.xlu0 %3022  ;;  %v3029_v47 = vpop.permute.xlu1 %3028 }
 0x325   : > { %v3118_v55 = vsel %vm679_vm1, %v3860_v14, %v3023_v60  ;;  %v3121_v57 = vsel %vm679_vm1, %v3861_v44, %v3029_v47  ;;  %v3881_v60 = vld [vmem:[%s4007_s22 + $0xb8] sm:$0xff]  ;;  %v3882_v44 = vld [vmem:[%s4007_s22 + $0xd0] sm:$0xff] }
 0x326   : > { %3151 = vst.msk [vmem:[%s5033_s29] sm:$0xff] %vm3150_vm2, %v3118_v55  ;;  %3154 = vst.msk [vmem:[%s5033_s29 + $0x18] sm:$0xff] %vm3150_vm2, %v3121_v57 }
 0x328   : > { %v3035_v8 = vpop.permute.xlu0 %3034  ;;  %v3025_v45 = vpop.permute.xlu1 %3024 }
 0x329   : > { %v3124_v25 = vsel %vm679_vm1, %v3862_v33, %v3035_v8  ;;  %v3119_v46 = vsel %vm679_vm1, %v3863_v13, %v3025_v45  ;;  %v3883_v8 = vld [vmem:[%s4007_s22 + $0xa8] sm:$0xff]  ;;  %v3884_v13 = vld [vmem:[%s4007_s22 + $0xc0] sm:$0xff] }
 0x32a   : > { %3157 = vst.msk [vmem:[%s5033_s29 + $0x30] sm:$0xff] %vm3150_vm2, %v3124_v25  ;;  %3152 = vst.msk [vmem:[%s5033_s29 + $0x8] sm:$0xff] %vm3150_vm2, %v3119_v46 }
 0x32c   : > { %v3031_v37 = vpop.permute.xlu0 %3030  ;;  %v3037_v20 = vpop.permute.xlu1 %3036 }
 0x32d   : > { %v3122_v23 = vsel %vm679_vm1, %v3864_v50, %v3031_v37  ;;  %v3125_v21 = vsel %vm679_vm1, %v3865_v48, %v3037_v20  ;;  %v3885_v37 = vld [vmem:[%s4007_s22 + $0xd8] sm:$0xff] }
 0x32e   : > { %3155 = vst.msk [vmem:[%s5033_s29 + $0x20] sm:$0xff] %vm3150_vm2, %v3122_v23  ;;  %3158 = vst.msk [vmem:[%s5033_s29 + $0x38] sm:$0xff] %vm3150_vm2, %v3125_v21  ;;  %v3886_v23 = vld [vmem:[%s4007_s22 + $0xc8] sm:$0xff] }
 0x330   : > { %v3043_v41 = vpop.permute.xlu0 %3042  ;;  %v3033_v18 = vpop.permute.xlu1 %3032 }
 0x331   : > { %v3128_v15 = vsel %vm679_vm1, %v3866_v24, %v3043_v41  ;;  %v3123_v54 = vsel %vm679_vm1, %v3867_v51, %v3033_v18  ;;  %v3887_v41 = vld [vmem:[%s4007_s22 + $0xe0] sm:$0xff]  ;;  %v3888_v51 = vld [vmem:[%s4007_s22 + $0xf0] sm:$0xff] }
 0x332   : > { %3161 = vst.msk [vmem:[%s5033_s29 + $0x50] sm:$0xff] %vm3150_vm2, %v3128_v15  ;;  %3156 = vst.msk [vmem:[%s5033_s29 + $0x28] sm:$0xff] %vm3150_vm2, %v3123_v54 }
 0x334   : > { %v3039_v16 = vpop.permute.xlu0 %3038  ;;  %v3045_v6 = vpop.permute.xlu1 %3044 }
 0x335   : > { %v3126_v62 = vsel %vm679_vm1, %v3868_v5, %v3039_v16  ;;  %v3129_v29 = vsel %vm679_vm1, %v3869_v7, %v3045_v6  ;;  %v3889_v16 = vld [vmem:[%s4007_s22 + $0xe8] sm:$0xff] }
 0x336   : > { %3159 = vst.msk [vmem:[%s5033_s29 + $0x40] sm:$0xff] %vm3150_vm2, %v3126_v62  ;;  %3162 = vst.msk [vmem:[%s5033_s29 + $0x58] sm:$0xff] %vm3150_vm2, %v3129_v29  ;;  %v3890_v62 = vld [vmem:[%s4007_s22 + $0xf8] sm:$0xff] }
 0x338   : > { %v3051_v63 = vpop.permute.xlu0 %3050  ;;  %v3041_v28 = vpop.permute.xlu1 %3040 }
 0x339   : > { %v3132_v27 = vsel %vm679_vm1, %v3870_v19, %v3051_v63  ;;  %v3127_v31 = vsel %vm679_vm1, %v3871_v0, %v3041_v28 }
 0x33a   : > { %3165 = vst.msk [vmem:[%s5033_s29 + $0x70] sm:$0xff] %vm3150_vm2, %v3132_v27  ;;  %3160 = vst.msk [vmem:[%s5033_s29 + $0x48] sm:$0xff] %vm3150_vm2, %v3127_v31 }
 0x33c   : > { %v3047_v40 = vpop.permute.xlu0 %3046  ;;  %v3053_v35 = vpop.permute.xlu1 %3052 }
 0x33d   : > { %v3130_v22 = vsel %vm679_vm1, %v3872_v58, %v3047_v40  ;;  %v3133_v49 = vsel %vm679_vm1, %v3873_v12, %v3053_v35 }
 0x33e   : > { %3163 = vst.msk [vmem:[%s5033_s29 + $0x60] sm:$0xff] %vm3150_vm2, %v3130_v22  ;;  %3166 = vst.msk [vmem:[%s5033_s29 + $0x78] sm:$0xff] %vm3150_vm2, %v3133_v49 }
 0x340   : > { %v3059_v42 = vpop.permute.xlu0 %3058  ;;  %v3049_v17 = vpop.permute.xlu1 %3048 }
 0x341   : > { %v3136_v43 = vsel %vm679_vm1, %v3874_v52, %v3059_v42  ;;  %v3131_v59 = vsel %vm679_vm1, %v3875_v2, %v3049_v17 }
 0x342   : > { %3169 = vst.msk [vmem:[%s5033_s29 + $0x90] sm:$0xff] %vm3150_vm2, %v3136_v43  ;;  %3164 = vst.msk [vmem:[%s5033_s29 + $0x68] sm:$0xff] %vm3150_vm2, %v3131_v59 }
 0x344   : > { %v3055_v56 = vpop.permute.xlu0 %3054  ;;  %v3061_v38 = vpop.permute.xlu1 %3060 }
 0x345   : > { %v3134_v9 = vsel %vm679_vm1, %v3876_v11, %v3055_v56  ;;  %v3137_v36 = vsel %vm679_vm1, %v3877_v61, %v3061_v38 }
 0x346   : > { %3167 = vst.msk [vmem:[%s5033_s29 + $0x80] sm:$0xff] %vm3150_vm2, %v3134_v9  ;;  %3170 = vst.msk [vmem:[%s5033_s29 + $0x98] sm:$0xff] %vm3150_vm2, %v3137_v36 }
 0x348   : > { %v3067_v26 = vpop.permute.xlu0 %3066  ;;  %v3057_v4 = vpop.permute.xlu1 %3056 }
 0x349   : > { %v3140_v34 = vsel %vm679_vm1, %v3878_v32, %v3067_v26  ;;  %v3135_v30 = vsel %vm679_vm1, %v3879_v10, %v3057_v4 }
 0x34a   : > { %3173 = vst.msk [vmem:[%s5033_s29 + $0xb0] sm:$0xff] %vm3150_vm2, %v3140_v34  ;;  %3168 = vst.msk [vmem:[%s5033_s29 + $0x88] sm:$0xff] %vm3150_vm2, %v3135_v30 }
 0x34c   : > { %v3063_v3 = vpop.permute.xlu0 %3062  ;;  %v3069_v53 = vpop.permute.xlu1 %3068 }
 0x34d   : > { %v3138_v39 = vsel %vm679_vm1, %v3880_v1, %v3063_v3  ;;  %v3141_v47 = vsel %vm679_vm1, %v3881_v60, %v3069_v53 }
 0x34e   : > { %3171 = vst.msk [vmem:[%s5033_s29 + $0xa0] sm:$0xff] %vm3150_vm2, %v3138_v39  ;;  %3174 = vst.msk [vmem:[%s5033_s29 + $0xb8] sm:$0xff] %vm3150_vm2, %v3141_v47 }
 0x350   : > { %v3075_v14 = vpop.permute.xlu0 %3074  ;;  %v3065_v55 = vpop.permute.xlu1 %3064 }
 0x351   : > { %v3144_v57 = vsel %vm679_vm1, %v3882_v44, %v3075_v14  ;;  %v3139_v45 = vsel %vm679_vm1, %v3883_v8, %v3065_v55 }
 0x352   : > { %3177 = vst.msk [vmem:[%s5033_s29 + $0xd0] sm:$0xff] %vm3150_vm2, %v3144_v57  ;;  %3172 = vst.msk [vmem:[%s5033_s29 + $0xa8] sm:$0xff] %vm3150_vm2, %v3139_v45 }
 0x354   : > { %v3071_v33 = vpop.permute.xlu0 %3070  ;;  %v3077_v25 = vpop.permute.xlu1 %3076 }
 0x355   : > { %v3142_v46 = vsel %vm679_vm1, %v3884_v13, %v3071_v33  ;;  %v3145_v20 = vsel %vm679_vm1, %v3885_v37, %v3077_v25 }
 0x356   : > { %3175 = vst.msk [vmem:[%s5033_s29 + $0xc0] sm:$0xff] %vm3150_vm2, %v3142_v46  ;;  %3178 = vst.msk [vmem:[%s5033_s29 + $0xd8] sm:$0xff] %vm3150_vm2, %v3145_v20 }
 0x358   : > { %v3073_v50 = vpop.permute.xlu1 %3072 }
 0x359   : > { %v3143_v48 = vsel %vm679_vm1, %v3886_v23, %v3073_v50 }
 0x35a   : > { %3176 = vst.msk [vmem:[%s5033_s29 + $0xc8] sm:$0xff] %vm3150_vm2, %v3143_v48  ;;  %v3079_v21 = vpop.permute.xlu0 %3078 }
 0x35b   : > { %v3146_v18 = vsel %vm679_vm1, %v3887_v41, %v3079_v21 }
 0x35c   : > { %3179 = vst.msk [vmem:[%s5033_s29 + $0xe0] sm:$0xff] %vm3150_vm2, %v3146_v18 }
 0x35e   : > { %v3083_v24 = vpop.permute.xlu0 %3082  ;;  %v3081_v15 = vpop.permute.xlu1 %3080 }
 0x35f   : > { %v3148_v54 = vsel %vm679_vm1, %v3888_v51, %v3083_v24  ;;  %v3147_v6 = vsel %vm679_vm1, %v3889_v16, %v3081_v15 }
 0x360   : > { %3181 = vst.msk [vmem:[%s5033_s29 + $0xf0] sm:$0xff] %vm3150_vm2, %v3148_v54  ;;  %3180 = vst.msk [vmem:[%s5033_s29 + $0xe8] sm:$0xff] %vm3150_vm2, %v3147_v6 }
 0x362   : > { %v3085_v5 = vpop.permute.xlu1 %3084 }
 0x363   : > { %v3149_v7 = vsel %vm679_vm1, %v3890_v62, %v3085_v5 }
 0x364   : > { %3182 = vst.msk [vmem:[%s5033_s29 + $0xf8] sm:$0xff] %vm3150_vm2, %v3149_v7 }
 0x365 PF: > { %s19_s11 = sadd.s32 1, %s3913_s11   ;;  %s5192_s30 = smov %s3909_s10 }
 0x366   : > { %p16_p5 = scmp.ge.s32.totalorder %s19_s11, 4   ;;  %s5193_s10 = smov %s5195_s12 }
 0x368   :  { %18 = sbr.rel (!%p16_p5) target bundleno = 2 (0x2), region = 94 }

</bundles_post_ra>
